<compile_context>
chip_gen: v5e
topology: v5e:2x2
jax: 0.10.0
libtpu: 0.0.40
codegen_flags: <defaults>
</compile_context>

<pallas_src>
import functools

import jax
import jax.numpy as jnp
import numpy as np
from jax.experimental import pallas as pl
from jax.experimental.pallas import tpu as pltpu


def _clip_loss_kernel(scale_ref, img_ref, txt_t_ref, txt_row_ref, loss_ref,
                      m_r_ref, l_r_ref, m_c_ref, l_c_ref, acc_ref, *, n_total):
    i = pl.program_id(0)          # row (image) tile
    j = pl.program_id(1)          # column (text) tile -- innermost
    ni = pl.num_programs(0)
    nj = pl.num_programs(1)

    scale = scale_ref[0]

    # ---- explicit zeroing of the SMEM scalar accumulators at grid step (0,0) ----
    @pl.when((i == 0) & (j == 0))
    def _():
        acc_ref[0] = 0.0          # running sum of per-row logsumexp
        acc_ref[1] = 0.0          # running sum of diagonal (paired) logits

    # ---- per-row-tile init + diagonal (paired) logits, once per row tile ----
    @pl.when(j == 0)
    def _():
        m_r_ref[...] = jnp.full_like(m_r_ref, -jnp.inf)
        l_r_ref[...] = jnp.zeros_like(l_r_ref)
        # diag[k] = scale * <img_k, txt_k>, straight from the (TM, D) feature
        # tiles in f32 -- O(TM*D) VPU work, no NxN iota/mask.
        diag_sum = jnp.sum(img_ref[...].astype(jnp.float32) *
                           txt_row_ref[...].astype(jnp.float32))
        acc_ref[1] = acc_ref[1] + scale * diag_sum

    # ---- per-column-tile init, once (at the first row tile) ----
    @pl.when(i == 0)
    def _():
        m_c_ref[j] = jnp.full((1, m_c_ref.shape[2]), -jnp.inf, dtype=jnp.float32)
        l_c_ref[j] = jnp.zeros((1, l_c_ref.shape[2]), dtype=jnp.float32)

    # ---- logits tile: native-dtype MXU matmul, scale folded into the f32 acc ----
    s = scale * jax.lax.dot_general(
        img_ref[...], txt_t_ref[...],
        dimension_numbers=(((1,), (0,)), ((), ())),
        preferred_element_type=jnp.float32)                      # (TM, TN) f32

    # ---- online row (per-image) softmax stats ----
    m_r_old = m_r_ref[...]                                        # (TM, 1)
    m_r_new = jnp.maximum(m_r_old, jnp.max(s, axis=1, keepdims=True))
    p_r = jnp.exp(s - m_r_new)
    l_r_new = (l_r_ref[...] * jnp.exp(m_r_old - m_r_new)
               + jnp.sum(p_r, axis=1, keepdims=True))
    m_r_ref[...] = m_r_new
    l_r_ref[...] = l_r_new

    # ---- online column (per-text) softmax stats ----
    m_c_old = m_c_ref[j]                                          # (1, TN)
    m_c_new = jnp.maximum(m_c_old, jnp.max(s, axis=0, keepdims=True))
    # NOTE: second exp per tile (see header) -- reusing p_r via exp(m_r - m_c)
    # outer corrections is numerically unsafe (0 * inf -> NaN) with large
    # logit_scale, so the extra EUP pass stays.
    p_c = jnp.exp(s - m_c_new)
    l_c_ref[j] = (l_c_ref[j] * jnp.exp(m_c_old - m_c_new)
                  + jnp.sum(p_c, axis=0, keepdims=True))
    m_c_ref[j] = m_c_new

    # ---- row-tile finalize: this row tile has now seen every column tile ----
    @pl.when(j == nj - 1)
    def _():
        lse_r_total = acc_ref[0] + jnp.sum(jnp.log(l_r_new) + m_r_new)
        acc_ref[0] = lse_r_total

        # ---- very last grid step: fold in column stats and emit the loss ----
        @pl.when(i == ni - 1)
        def _():
            lse_c_total = jnp.sum(jnp.log(l_c_ref[...]) + m_c_ref[...])
            loss_ref[0, 0] = ((lse_r_total + lse_c_total - 2.0 * acc_ref[1])
                              * (0.5 / n_total))


def _vmem_limit_bytes():
    """Scoped-VMEM limit to request: well under physical, above the default."""
    cap = 64 * 1024 * 1024
    try:
        cap = int(pltpu.get_tpu_info().vmem_capacity_bytes)
    except Exception:
        pass
    cap = max(cap, 32 * 1024 * 1024)
    return int(min(int(0.8 * cap), 100 * 1024 * 1024))


def _vmem_bytes_estimate(tm, tn, nj, d, dsize):
    """Conservative VMEM footprint for a (tm, tn) tiling (double-buffered)."""
    lane = 128
    pad = lambda x: -(-x // lane) * lane
    feat = 2 * tm * d * dsize            # image tile (double buffered)
    feat += 2 * tm * d * dsize           # paired text row tile (diag path)
    feat += 2 * d * pad(tn) * dsize      # text (D, TN) tile
    scratch = 2 * tm * lane * 4 + 2 * nj * pad(tn) * 4
    temps = 6 * tm * pad(tn) * 4         # s, p_r, p_c + compiler temps (f32)
    return feat + scratch + temps


def _select_tiles(n, d, dsize, budget):
    """Pick (tm, tn); prefer a fully VMEM-resident text matrix (tn == n)."""
    # dtype-packing minimum sublane tile for the row blocks.
    if dsize >= 4:
        min_tm = 8
    elif dsize == 2:
        min_tm = 16
    else:
        min_tm = 32
    tm_cands = [t for t in (1024, 512, 256, 128, 64, 32, 16, 8)
                if t >= min_tm and t <= n and n % t == 0]
    if not tm_cands:
        tm_cands = [n]                   # full dim is always a legal block

    # Path 1: resident text -- text read from HBM once, MXU-bound at any tm.
    for tm in tm_cands:
        if _vmem_bytes_estimate(tm, n, 1, d, dsize) <= budget:
            if tm >= min(256, n):
                return tm, n
            break                        # don't shrink rows that far for residency

    # Path 2: stream (D, TN) text tiles; TN aligned to the 256-wide MXU on
    # v6e/v7x (512/256), 128 only as a last aligned resort; TM as large as the
    # VMEM budget allows so text re-reads amortize.
    tn = n
    for cand in (512, 256, 128):
        if cand <= n and n % cand == 0:
            tn = cand
            break
    nj = max(n // tn, 1)
    for tm in tm_cands:
        if _vmem_bytes_estimate(tm, tn, nj, d, dsize) <= budget:
            return tm, tn
    return tm_cands[-1], tn


def clip_loss(image_features, text_features, logit_scale, *, tm=None, tn=None,
              use_bf16_matmul=False):
    """Pallas TPU implementation of ClipLoss.forward (world_size=1)."""
    n, d = image_features.shape
    assert text_features.shape == (n, d)

    if use_bf16_matmul and image_features.dtype == jnp.float32:
        # v6e/v7x: f32 matmuls run at a fraction of bf16 MXU throughput and
        # double the streamed bytes per tile; accumulation stays f32 in-kernel.
        image_features = image_features.astype(jnp.bfloat16)
        text_features = text_features.astype(jnp.bfloat16)

    dsize = jnp.dtype(image_features.dtype).itemsize
    vmem_limit = _vmem_limit_bytes()
    budget = max(vmem_limit - 8 * 1024 * 1024, 24 * 1024 * 1024)
    auto_tm, auto_tn = _select_tiles(n, d, dsize, budget)
    if tm is None:
        tm = auto_tm
    if tn is None:
        tn = auto_tn
    assert n % tm == 0 and n % tn == 0, (n, tm, tn)
    ni, nj = n // tm, n // tn

    scale = jnp.asarray(logit_scale, dtype=jnp.float32).reshape((1,))
    # One-time layout change outside the kernel: text as (D, N) so each grid
    # step is a plain (TM,D)@(D,TN) MXU matmul.
    text_t = jnp.transpose(text_features)

    text_hbm_reads = 1 if tn == n else ni
    cost = pl.CostEstimate(
        flops=2 * n * n * d + 8 * n * n,
        transcendentals=2 * n * n,
        bytes_accessed=dsize * n * d * (2 + text_hbm_reads) + 4)

    out = pl.pallas_call(
        functools.partial(_clip_loss_kernel, n_total=n),
        out_shape=jax.ShapeDtypeStruct((1, 1), jnp.float32),
        grid=(ni, nj),
        in_specs=[
            pl.BlockSpec(memory_space=pltpu.SMEM),            # logit_scale
            pl.BlockSpec((tm, d), lambda i, j: (i, 0)),       # image rows
            pl.BlockSpec((d, tn), lambda i, j: (0, j)),       # text cols (D,N layout)
            pl.BlockSpec((tm, d), lambda i, j: (i, 0)),       # text rows (for diag)
        ],
        out_specs=pl.BlockSpec(memory_space=pltpu.SMEM),      # (1,1) scalar loss
        scratch_shapes=[
            pltpu.VMEM((tm, 1), jnp.float32),                 # running row max
            pltpu.VMEM((tm, 1), jnp.float32),                 # running row sum
            pltpu.VMEM((nj, 1, tn), jnp.float32),             # running col max (all cols)
            pltpu.VMEM((nj, 1, tn), jnp.float32),             # running col sum (all cols)
            pltpu.SMEM((2,), jnp.float32),                    # [sum lse_rows, sum diag]
        ],
        compiler_params=pltpu.CompilerParams(
            dimension_semantics=("arbitrary", "arbitrary"),
            vmem_limit_bytes=vmem_limit),
        cost_estimate=cost,
    )(scale, image_features, text_t, text_features)
    return out[0, 0]


def _clip_loss_ref(image_features, text_features, logit_scale):
    img = image_features.astype(jnp.float32)
    txt = text_features.astype(jnp.float32)
    logits_i = logit_scale * img @ txt.T
    logits_t = logit_scale * txt @ img.T
    labels = jnp.arange(img.shape[0])

    def ce(logits, labels):
        lse = jax.scipy.special.logsumexp(logits, axis=1)
        correct = jnp.take_along_axis(logits, labels[:, None], axis=1)[:, 0]
        return jnp.mean(lse - correct)

    return 0.5 * (ce(logits_i, labels) + ce(logits_t, labels))


if __name__ == "__main__":
    key = jax.random.PRNGKey(0)
    k1, k2 = jax.random.split(key)

    N, D = 256, 128  # small batch of paired image/text embeddings
    image_features = jax.random.normal(k1, (N, D), dtype=jnp.float32)
    text_features = jax.random.normal(k2, (N, D), dtype=jnp.float32)
    image_features = image_features / jnp.linalg.norm(image_features, axis=-1, keepdims=True)
    text_features = text_features / jnp.linalg.norm(text_features, axis=-1, keepdims=True)
    logit_scale = jnp.float32(np.exp(np.log(1.0 / 0.07)))  # CLIP's learned scale, exp'd

    ref = _clip_loss_ref(image_features, text_features, logit_scale)

    # Multi-tile path (grid 2x2) exercising the online row/column accumulation
    # with streamed text column tiles.
    loss_tiled = jax.block_until_ready(
        clip_loss(image_features, text_features, logit_scale, tm=128, tn=128))
    assert np.allclose(np.asarray(loss_tiled), np.asarray(ref),
                       rtol=1e-3, atol=1e-3), (loss_tiled, ref)

    # Auto-picked tiles: text fully VMEM-resident (tn == N), single HBM read.
    loss_auto = jax.block_until_ready(
        clip_loss(image_features, text_features, logit_scale))
    assert np.allclose(np.asarray(loss_auto), np.asarray(ref),
                       rtol=1e-3, atol=1e-3), (loss_auto, ref)

    # bf16 features go straight into the MXU (no f32 upcast inside the kernel).
    loss_bf16 = jax.block_until_ready(
        clip_loss(image_features.astype(jnp.bfloat16),
                  text_features.astype(jnp.bfloat16), logit_scale,
                  tm=128, tn=128))
    assert np.allclose(np.asarray(loss_bf16), np.asarray(ref),
                       rtol=0.0, atol=5e-2), (loss_bf16, ref)

    # Wrapper-side bf16 cast of f32 inputs (v6e/v7x MXU throughput path).
    loss_cast = jax.block_until_ready(
        clip_loss(image_features, text_features, logit_scale,
                  use_bf16_matmul=True))
    assert np.allclose(np.asarray(loss_cast), np.asarray(ref),
                       rtol=0.0, atol=5e-2), (loss_cast, ref)

    print("KERNEL_OK")
</pallas_src>

<mosaic_0001>
module attributes {stable_mosaic.version = 11 : i64} {
  func.func @_clip_loss_kernel(%arg0: i32, %arg1: i32, %arg2: memref<1xf32, #tpu.memory_space<smem>>, %arg3: memref<128x128xf32, #tpu.memory_space<vmem>>, %arg4: memref<128x128xf32, #tpu.memory_space<vmem>>, %arg5: memref<128x128xf32, #tpu.memory_space<vmem>>, %arg6: memref<1x1xf32, #tpu.memory_space<smem>>, %arg7: memref<128x1xf32, #tpu.memory_space<vmem>>, %arg8: memref<128x1xf32, #tpu.memory_space<vmem>>, %arg9: memref<2x1x128xf32, #tpu.memory_space<vmem>>, %arg10: memref<2x1x128xf32, #tpu.memory_space<vmem>>, %arg11: memref<2xf32, #tpu.memory_space<smem>>) attributes {dimension_semantics = [#tpu.dimension_semantics<arbitrary>, #tpu.dimension_semantics<arbitrary>], iteration_bounds = array<i64: 2, 2>, scalar_prefetch = 0 : i64, scratch_operands = 5 : i64, tpu.core_type = #tpu.core_type<tc>, window_params = [{transform_indices = @transform_0, window_bounds = array<i64: 1>}, {transform_indices = @transform_1, window_bounds = array<i64: 128, 128>}, {transform_indices = @transform_2, window_bounds = array<i64: 128, 128>}, {transform_indices = @transform_3, window_bounds = array<i64: 128, 128>}, {transform_indices = @transform_4, window_bounds = array<i64: 1, 1>}]} {
    %c0 = arith.constant 0 : index
    %0 = memref.load %arg2[%c0] : memref<1xf32, #tpu.memory_space<smem>>
    %c0_i32 = arith.constant 0 : i32
    %1 = arith.cmpi eq, %arg0, %c0_i32 : i32
    %c0_i32_0 = arith.constant 0 : i32
    %2 = arith.cmpi eq, %arg1, %c0_i32_0 : i32
    %3 = arith.andi %1, %2 : i1
    %4 = arith.extui %3 : i1 to i32
    %c0_i32_1 = arith.constant 0 : i32
    %5 = arith.cmpi ne, %4, %c0_i32_1 : i32
    scf.if %5 {
      %cst_31 = arith.constant 0.000000e+00 : f32
      %c0_32 = arith.constant 0 : index
      %62 = memref.load %arg11[%c0_32] : memref<2xf32, #tpu.memory_space<smem>>
      memref.store %cst_31, %arg11[%c0_32] : memref<2xf32, #tpu.memory_space<smem>>
      %cst_33 = arith.constant 0.000000e+00 : f32
      %c1 = arith.constant 1 : index
      %63 = memref.load %arg11[%c1] : memref<2xf32, #tpu.memory_space<smem>>
      memref.store %cst_33, %arg11[%c1] : memref<2xf32, #tpu.memory_space<smem>>
    } else {
    }
    %c0_i32_2 = arith.constant 0 : i32
    %6 = arith.cmpi eq, %arg1, %c0_i32_2 : i32
    %7 = arith.extui %6 : i1 to i32
    %c0_i32_3 = arith.constant 0 : i32
    %8 = arith.cmpi ne, %7, %c0_i32_3 : i32
    scf.if %8 {
      %cst_31 = arith.constant 0xFF800000 : f32
      %62 = vector.broadcast %cst_31 : f32 to vector<128x1xf32>
      %c0_32 = arith.constant 0 : index
      %c0_33 = arith.constant 0 : index
      %63 = vector.load %arg7[%c0_32, %c0_33] : memref<128x1xf32, #tpu.memory_space<vmem>>, vector<128x1xf32>
      tpu.vector_store %arg7[%c0_32, %c0_33], %62 {strides = array<i32>} : memref<128x1xf32, #tpu.memory_space<vmem>>, vector<128x1xf32>,
      %cst_34 = arith.constant 0.000000e+00 : f32
      %64 = vector.broadcast %cst_34 : f32 to vector<128x1xf32>
      %c0_35 = arith.constant 0 : index
      %c0_36 = arith.constant 0 : index
      %65 = vector.load %arg8[%c0_35, %c0_36] : memref<128x1xf32, #tpu.memory_space<vmem>>, vector<128x1xf32>
      tpu.vector_store %arg8[%c0_35, %c0_36], %64 {strides = array<i32>} : memref<128x1xf32, #tpu.memory_space<vmem>>, vector<128x1xf32>,
      %c0_37 = arith.constant 0 : index
      %c0_38 = arith.constant 0 : index
      %66 = vector.load %arg3[%c0_37, %c0_38] : memref<128x128xf32, #tpu.memory_space<vmem>>, vector<128x128xf32>
      %c0_39 = arith.constant 0 : index
      %c0_40 = arith.constant 0 : index
      %67 = vector.load %arg5[%c0_39, %c0_40] : memref<128x128xf32, #tpu.memory_space<vmem>>, vector<128x128xf32>
      %68 = arith.mulf %66, %67 : vector<128x128xf32>
      %69 = vector.shape_cast %68 : vector<128x128xf32> to vector<1x128x128xf32>
      %cst_41 = arith.constant dense<0.000000e+00> : vector<1xf32>
      %70 = vector.multi_reduction <add>, %69, %cst_41 [1, 2] : vector<1x128x128xf32> to vector<1xf32>
      %71 = vector.shape_cast %70 : vector<1xf32> to vector<1x1x1xf32>
      %72 = vector.extract %71[0, 0, 0] : f32 from vector<1x1x1xf32>
      %c1 = arith.constant 1 : index
      %73 = memref.load %arg11[%c1] : memref<2xf32, #tpu.memory_space<smem>>
      %74 = arith.mulf %0, %72 : f32
      %75 = arith.addf %73, %74 : f32
      %c1_42 = arith.constant 1 : index
      %76 = memref.load %arg11[%c1_42] : memref<2xf32, #tpu.memory_space<smem>>
      memref.store %75, %arg11[%c1_42] : memref<2xf32, #tpu.memory_space<smem>>
    } else {
    }
    %c0_i32_4 = arith.constant 0 : i32
    %9 = arith.cmpi eq, %arg0, %c0_i32_4 : i32
    %10 = arith.extui %9 : i1 to i32
    %c0_i32_5 = arith.constant 0 : i32
    %11 = arith.cmpi ne, %10, %c0_i32_5 : i32
    scf.if %11 {
      %cst_31 = arith.constant 0xFF800000 : f32
      %62 = vector.broadcast %cst_31 : f32 to vector<1x128xf32>
      %63 = arith.index_cast %arg1 : i32 to index
      %c0_32 = arith.constant 0 : index
      %c0_33 = arith.constant 0 : index
      %64 = vector.load %arg9[%63, %c0_32, %c0_33] : memref<2x1x128xf32, #tpu.memory_space<vmem>>, vector<1x1x128xf32>
      %65 = vector.shape_cast %64 : vector<1x1x128xf32> to vector<1x128xf32>
      %66 = vector.shape_cast %62 : vector<1x128xf32> to vector<1x1x128xf32>
      tpu.vector_store %arg9[%63, %c0_32, %c0_33], %66 {strides = array<i32>} : memref<2x1x128xf32, #tpu.memory_space<vmem>>, vector<1x1x128xf32>,
      %cst_34 = arith.constant 0.000000e+00 : f32
      %67 = vector.broadcast %cst_34 : f32 to vector<1x128xf32>
      %68 = arith.index_cast %arg1 : i32 to index
      %c0_35 = arith.constant 0 : index
      %c0_36 = arith.constant 0 : index
      %69 = vector.load %arg10[%68, %c0_35, %c0_36] : memref<2x1x128xf32, #tpu.memory_space<vmem>>, vector<1x1x128xf32>
      %70 = vector.shape_cast %69 : vector<1x1x128xf32> to vector<1x128xf32>
      %71 = vector.shape_cast %67 : vector<1x128xf32> to vector<1x1x128xf32>
      tpu.vector_store %arg10[%68, %c0_35, %c0_36], %71 {strides = array<i32>} : memref<2x1x128xf32, #tpu.memory_space<vmem>>, vector<1x1x128xf32>,
    } else {
    }
    %c0_6 = arith.constant 0 : index
    %c0_7 = arith.constant 0 : index
    %12 = vector.load %arg3[%c0_6, %c0_7] : memref<128x128xf32, #tpu.memory_space<vmem>>, vector<128x128xf32>
    %c0_8 = arith.constant 0 : index
    %c0_9 = arith.constant 0 : index
    %13 = vector.load %arg4[%c0_8, %c0_9] : memref<128x128xf32, #tpu.memory_space<vmem>>, vector<128x128xf32>
    %cst = arith.constant dense<0.000000e+00> : vector<128x128xf32>
    %14 = tpu.matmul %12, %13, %cst {dimension_numbers = #tpu.dot_dimension_numbers<[1], [0], [0], [1], [0, 0, 1, 1], [], []>} : vector<128x128xf32>, vector<128x128xf32>, vector<128x128xf32> -> vector<128x128xf32>
    %15 = vector.broadcast %0 : f32 to vector<128x128xf32>
    %16 = arith.mulf %15, %14 : vector<128x128xf32>
    %c0_10 = arith.constant 0 : index
    %c0_11 = arith.constant 0 : index
    %17 = vector.load %arg7[%c0_10, %c0_11] : memref<128x1xf32, #tpu.memory_space<vmem>>, vector<128x1xf32>
    %cst_12 = arith.constant dense<0xFF800000> : vector<128xf32>
    %18 = vector.multi_reduction <maximumf>, %16, %cst_12 [1] : vector<128x128xf32> to vector<128xf32>
    %19 = vector.shape_cast %18 : vector<128xf32> to vector<128x1xf32>
    %20 = arith.maximumf %17, %19 : vector<128x1xf32>
    %21 = vector.broadcast %20 : vector<128x1xf32> to vector<128x128xf32>
    %22 = arith.subf %16, %21 : vector<128x128xf32>
    %23 = math.exp %22 : vector<128x128xf32>
    %c0_13 = arith.constant 0 : index
    %c0_14 = arith.constant 0 : index
    %24 = vector.load %arg8[%c0_13, %c0_14] : memref<128x1xf32, #tpu.memory_space<vmem>>, vector<128x1xf32>
    %25 = arith.subf %17, %20 : vector<128x1xf32>
    %26 = math.exp %25 : vector<128x1xf32>
    %27 = arith.mulf %24, %26 : vector<128x1xf32>
    %cst_15 = arith.constant dense<0.000000e+00> : vector<128xf32>
    %28 = vector.multi_reduction <add>, %23, %cst_15 [1] : vector<128x128xf32> to vector<128xf32>
    %29 = vector.shape_cast %28 : vector<128xf32> to vector<128x1xf32>
    %30 = arith.addf %27, %29 : vector<128x1xf32>
    %c0_16 = arith.constant 0 : index
    %c0_17 = arith.constant 0 : index
    %31 = vector.load %arg7[%c0_16, %c0_17] : memref<128x1xf32, #tpu.memory_space<vmem>>, vector<128x1xf32>
    tpu.vector_store %arg7[%c0_16, %c0_17], %20 {strides = array<i32>} : memref<128x1xf32, #tpu.memory_space<vmem>>, vector<128x1xf32>,
    %c0_18 = arith.constant 0 : index
    %c0_19 = arith.constant 0 : index
    %32 = vector.load %arg8[%c0_18, %c0_19] : memref<128x1xf32, #tpu.memory_space<vmem>>, vector<128x1xf32>
    tpu.vector_store %arg8[%c0_18, %c0_19], %30 {strides = array<i32>} : memref<128x1xf32, #tpu.memory_space<vmem>>, vector<128x1xf32>,
    %33 = arith.index_cast %arg1 : i32 to index
    %c0_20 = arith.constant 0 : index
    %c0_21 = arith.constant 0 : index
    %34 = vector.load %arg9[%33, %c0_20, %c0_21] : memref<2x1x128xf32, #tpu.memory_space<vmem>>, vector<1x1x128xf32>
    %35 = vector.shape_cast %34 : vector<1x1x128xf32> to vector<1x128xf32>
    %cst_22 = arith.constant dense<0xFF800000> : vector<128xf32>
    %36 = vector.multi_reduction <maximumf>, %16, %cst_22 [0] : vector<128x128xf32> to vector<128xf32>
    %37 = vector.shape_cast %36 : vector<128xf32> to vector<1x128xf32>
    %38 = arith.maximumf %35, %37 : vector<1x128xf32>
    %39 = vector.broadcast %38 : vector<1x128xf32> to vector<128x128xf32>
    %40 = arith.subf %16, %39 : vector<128x128xf32>
    %41 = math.exp %40 : vector<128x128xf32>
    %42 = arith.index_cast %arg1 : i32 to index
    %c0_23 = arith.constant 0 : index
    %c0_24 = arith.constant 0 : index
    %43 = vector.load %arg10[%42, %c0_23, %c0_24] : memref<2x1x128xf32, #tpu.memory_space<vmem>>, vector<1x1x128xf32>
    %44 = vector.shape_cast %43 : vector<1x1x128xf32> to vector<1x128xf32>
    %45 = arith.subf %35, %38 : vector<1x128xf32>
    %46 = math.exp %45 : vector<1x128xf32>
    %47 = arith.mulf %44, %46 : vector<1x128xf32>
    %cst_25 = arith.constant dense<0.000000e+00> : vector<128xf32>
    %48 = vector.multi_reduction <add>, %41, %cst_25 [0] : vector<128x128xf32> to vector<128xf32>
    %49 = vector.shape_cast %48 : vector<128xf32> to vector<1x128xf32>
    %50 = arith.addf %47, %49 : vector<1x128xf32>
    %51 = arith.index_cast %arg1 : i32 to index
    %c0_26 = arith.constant 0 : index
    %c0_27 = arith.constant 0 : index
    %52 = vector.load %arg10[%51, %c0_26, %c0_27] : memref<2x1x128xf32, #tpu.memory_space<vmem>>, vector<1x1x128xf32>
    %53 = vector.shape_cast %52 : vector<1x1x128xf32> to vector<1x128xf32>
    %54 = vector.shape_cast %50 : vector<1x128xf32> to vector<1x1x128xf32>
    tpu.vector_store %arg10[%51, %c0_26, %c0_27], %54 {strides = array<i32>} : memref<2x1x128xf32, #tpu.memory_space<vmem>>, vector<1x1x128xf32>,
    %55 = arith.index_cast %arg1 : i32 to index
    %c0_28 = arith.constant 0 : index
    %c0_29 = arith.constant 0 : index
    %56 = vector.load %arg9[%55, %c0_28, %c0_29] : memref<2x1x128xf32, #tpu.memory_space<vmem>>, vector<1x1x128xf32>
    %57 = vector.shape_cast %56 : vector<1x1x128xf32> to vector<1x128xf32>
    %58 = vector.shape_cast %38 : vector<1x128xf32> to vector<1x1x128xf32>
    tpu.vector_store %arg9[%55, %c0_28, %c0_29], %58 {strides = array<i32>} : memref<2x1x128xf32, #tpu.memory_space<vmem>>, vector<1x1x128xf32>,
    %c1_i32 = arith.constant 1 : i32
    %59 = arith.cmpi eq, %arg1, %c1_i32 : i32
    %60 = arith.extui %59 : i1 to i32
    %c0_i32_30 = arith.constant 0 : i32
    %61 = arith.cmpi ne, %60, %c0_i32_30 : i32
    scf.if %61 {
      %c0_31 = arith.constant 0 : index
      %62 = memref.load %arg11[%c0_31] : memref<2xf32, #tpu.memory_space<smem>>
      %63 = math.log %30 : vector<128x1xf32>
      %64 = arith.addf %63, %20 : vector<128x1xf32>
      %65 = vector.shape_cast %64 : vector<128x1xf32> to vector<1x128x1xf32>
      %cst_32 = arith.constant dense<0.000000e+00> : vector<1xf32>
      %66 = vector.multi_reduction <add>, %65, %cst_32 [1, 2] : vector<1x128x1xf32> to vector<1xf32>
      %67 = vector.shape_cast %66 : vector<1xf32> to vector<1x1x1xf32>
      %68 = vector.extract %67[0, 0, 0] : f32 from vector<1x1x1xf32>
      %69 = arith.addf %62, %68 : f32
      %c0_33 = arith.constant 0 : index
      %70 = memref.load %arg11[%c0_33] : memref<2xf32, #tpu.memory_space<smem>>
      memref.store %69, %arg11[%c0_33] : memref<2xf32, #tpu.memory_space<smem>>
      %c1_i32_34 = arith.constant 1 : i32
      %71 = arith.cmpi eq, %arg0, %c1_i32_34 : i32
      %72 = arith.extui %71 : i1 to i32
      %c0_i32_35 = arith.constant 0 : i32
      %73 = arith.cmpi ne, %72, %c0_i32_35 : i32
      scf.if %73 {
        %c0_36 = arith.constant 0 : index
        %c0_37 = arith.constant 0 : index
        %c0_38 = arith.constant 0 : index
        %74 = vector.load %arg10[%c0_36, %c0_37, %c0_38] : memref<2x1x128xf32, #tpu.memory_space<vmem>>, vector<2x1x128xf32>
        %75 = math.log %74 : vector<2x1x128xf32>
        %c0_39 = arith.constant 0 : index
        %c0_40 = arith.constant 0 : index
        %c0_41 = arith.constant 0 : index
        %76 = vector.load %arg9[%c0_39, %c0_40, %c0_41] : memref<2x1x128xf32, #tpu.memory_space<vmem>>, vector<2x1x128xf32>
        %77 = arith.addf %75, %76 : vector<2x1x128xf32>
        %78 = vector.shape_cast %77 : vector<2x1x128xf32> to vector<1x2x1x128xf32>
        %cst_42 = arith.constant dense<0.000000e+00> : vector<1xf32>
        %79 = vector.multi_reduction <add>, %78, %cst_42 [1, 2, 3] : vector<1x2x1x128xf32> to vector<1xf32>
        %80 = vector.shape_cast %79 : vector<1xf32> to vector<1x1x1x1xf32>
        %81 = vector.extract %80[0, 0, 0, 0] : f32 from vector<1x1x1x1xf32>
        %82 = arith.addf %69, %81 : f32
        %c1 = arith.constant 1 : index
        %83 = memref.load %arg11[%c1] : memref<2xf32, #tpu.memory_space<smem>>
        %cst_43 = arith.constant 2.000000e+00 : f32
        %84 = arith.mulf %cst_43, %83 : f32
        %85 = arith.subf %82, %84 : f32
        %cst_44 = arith.constant 0.001953125 : f32
        %86 = arith.mulf %85, %cst_44 : f32
        %c0_45 = arith.constant 0 : index
        %c0_46 = arith.constant 0 : index
        %87 = memref.load %arg6[%c0_45, %c0_46] : memref<1x1xf32, #tpu.memory_space<smem>>
        memref.store %86, %arg6[%c0_45, %c0_46] : memref<1x1xf32, #tpu.memory_space<smem>>
      } else {
      }
    } else {
    }
    return
  }
  func.func @transform_0(%arg0: i32, %arg1: i32) -> i32 {
    %c0_i32 = arith.constant 0 : i32
    %c0_i32_0 = arith.constant 0 : i32
    return %c0_i32 : i32
  }
  func.func @transform_1(%arg0: i32, %arg1: i32) -> (i32, i32) {
    %c0_i32 = arith.constant 0 : i32
    %c0_i32_0 = arith.constant 0 : i32
    return %arg0, %c0_i32 : i32, i32
  }
  func.func @transform_2(%arg0: i32, %arg1: i32) -> (i32, i32) {
    %c0_i32 = arith.constant 0 : i32
    %c0_i32_0 = arith.constant 0 : i32
    return %c0_i32, %arg1 : i32, i32
  }
  func.func @transform_3(%arg0: i32, %arg1: i32) -> (i32, i32) {
    %c0_i32 = arith.constant 0 : i32
    %c0_i32_0 = arith.constant 0 : i32
    return %arg0, %c0_i32 : i32, i32
  }
  func.func @transform_4(%arg0: i32, %arg1: i32) -> (i32, i32) {
    %c0_i32 = arith.constant 0 : i32
    %c0_i32_0 = arith.constant 0 : i32
    %c0_i32_1 = arith.constant 0 : i32
    return %c0_i32, %c0_i32_0 : i32, i32
  }
}

</mosaic_0001>

<bundles_post_ra>
// kernel: tpu_custom_call.1
= control target key start
LH: loop header
LB: loop body
LE: loop exit
PB: predicated region body
PF: predicated region fallthrough
CT: control target
= control target key end

     0   :  { %s2591_s0 = inlined_call_operand.<no memory space> [shape: f32[1], index: 0, kind: input, shape index: {}]   ;;  %s2592_s1 = inlined_call_operand.hbm [shape: f32[256,128], index: 1, kind: input, shape index: {}]   ;;  %s2593_s2 = inlined_call_operand.hbm [shape: f32[128,256], index: 2, kind: input, shape index: {}]   ;;  %s2594_s3 = inlined_call_operand.hbm [shape: f32[256,128], index: 3, kind: input, shape index: {}]   ;;  %s2595_s4 = inlined_call_operand.hbm [shape: f32[1,1], index: 4, kind: output, shape index: {}]  }
   0x1   :  { %2606 = sst [smem:[#allocation27_spill]] %s2593_s2 }
   0x2   :  { %9 = sst [smem:[#allocation7]] %s2591_s0 }
   0x3   :  { %10 = vsyncpa [#allocation9], 0 }
   0x4   :  { %12 = vsyncpa [#allocation9 + $0x1], 0 }
   0x5   :  { %13 = vsyncpa [#allocation12], 0 }
   0x6   :  { %15 = vsyncpa [#allocation12 + $0x1], 0 }
   0x7   :  { %16 = vsyncpa [#allocation10], 0  ;;  %s1839_s17 = smov 0   ;;  %s1841_s18 = smov 0  }
   0x8   :  { %s1843_s19 = smov 0   ;;  %s1845_s20 = smov 0  }
   0x9   :  { %s1847_s21 = smov 0   ;;  %s1849_s22 = smov 0  }
   0xa   :  { %s1851_s23 = smov 0   ;;  %s1853_s0 = smov 0  }
   0xb   :  { %s1855_s24 = smov 0   ;;  %s1857_s25 = smov 0  }
   0xc   :  { %s1859_s26 = smov 0  }
   0xd LB: > { %2607 = sst [smem:[#allocation19_spill]] %s1767_s19  ;;  %s31_s27 = sadd.s32 1, %s1791_s24  ;;  %s1799_s26 = sphi %s1859_s26, %s22_s26   ;;  %s1795_s25 = sphi %s1857_s25, %s2647_s25   ;;  %s1791_s24 = sphi %s1855_s24, %s2646_s24   ;;  %s1787_s0 = sphi %s1853_s0, %s2645_s0   ;;  %s1783_s23 = sphi %s1851_s23, %s2644_s23   ;;  %s1779_s22 = sphi %s1849_s22, %s2643_s22   ;;  %s1775_s21 = sphi %s1847_s21, %s2651_s21   ;;  %s1771_s20 = sphi %s1845_s20, %s2650_s20   ;;  %s1767_s19 = sphi %s1843_s19, %s2641_s19   ;;  %s1763_s18 = sphi %s1841_s18, %s2649_s18   ;;  %s1759_s17 = sphi %s1839_s17, %s2648_s17  }
   0xe   : > { %2608 = sst [smem:[#allocation20_spill]] %s1779_s22  ;;  %p70_p0 = scmp.eq.s32.totalorder %s1799_s26, 0 }
   0xf   : > { %2609 = sst [smem:[#allocation21_spill]] %s1791_s24  ;;  %p1896_p1 = scmp.ge.s32.totalorder %s31_s27, 2 }
  0x10   : > { %2610 = sst [smem:[#allocation22_spill]] %s1795_s25  ;;  %s88_s29 = sadd.s32 1, %s1767_s19 }
  0x11   : > { %p95_p2 = scmp.ne.s32.totalorder %s1767_s19, %s1763_s18  ;;  %p101_p3 = scmp.ne.s32.totalorder %s1763_s18, %s1759_s17 }
  0x12   : > { %s2653_s27 = smov (%p1896_p1, %s31_s27), 0  ;;  %p1355_p5 = scmp.lt.s32.totalorder %s1799_s26, 4 }
  0x13   : > { %2612 = sst [smem:[#allocation23_spill]] %s2653_s27  ;;  %p1911_p4 = por %p95_p2, %p70_p0 }
  0x14   : > { %s85_s5 = ssub.s32 %s1791_s24, %s2653_s27  ;;  %s197_s6 = sand.u32 1, %s1799_s26  }
  0x15   : > { %p86_p6 = scmp.eq.s32.totalorder %s85_s5, 0  ;;  %s199_s8 = sand.u32 1, %s1767_s19  }
  0x16   : > { %s1257_s9 = sshll.u32 %s199_s8, 7  ;;  %s1258_s10 = sshll.u32 %s1791_s24, 3 }
  0x17   : > { %s1920_s7 = scalar_select %p86_p6, %s1767_s19, %s88_s29  }
  0x18   : > { %s2615_s2 = sld [smem:[#allocation27_spill]]  ;;  %s201_s15 = scalar_lea.vmem [#allocation11], %s1257_s9 }
  0x19   : > { %2614 = sst [smem:[#allocation24_spill]] %s1920_s7  ;;  %s208_s16 = sshll.u32 %s201_s15, 4  ;;  %s209_s16 = int_to_ptr.vmem [resolvable:$true] %s208_s16 }
  0x1a   : > { %p1349_p7 = pnand %p1355_p5, %p1911_p4  ;;  %p1262_p8 = scmp.ge.s32.totalorder %s1799_s26, 1 }
  0x1b   : > { %p238_p9 = scmp.lt.s32.totalorder %s1799_s26, 5  ;;  %s1933_s29 = scalar_lea.sflag [#allocation12], %s197_s6 }
  0x1c   : > { %s1801_s5 = smov 256   ;;  %s2596_s8 = smov 128  }
  0x1d   : > { %s2598_s9 = smov 8   ;;  %p1938_p10 = pnand %p1262_p8, %p238_p9 }
  0x1e   : > { %s205_s13 = scalar_lea.hbm %s2615_s2, %s1258_s10  ;;  %s1943_s10 = sadd.s32 4294967295, %s1799_s26  }
  0x1f   : > { %s206_s14 = sshll.u32 %s205_s13, 4  ;;  %s34_s6 = sadd.s32 1, %s1795_s25  ;;  %s207_s14 = int_to_ptr.hbm [resolvable:$true] %s206_s14 }
  0x20   : > { %1351 = dma.hbm_to_vmem [thread:$0]  (!%p1349_p7), %s207_s14, 2048, %s209_s16, %s1933_s29, %s1801_s5, %s2596_s8, %s2598_s9  }
  0x21   : > { %s2655_s6 = smov (!%p1896_p1, %s34_s6), %s1795_s25  ;;  %s62_s11 = sadd.s32 1, %s1779_s22 }
  0x22   : > { %p69_p11 = scmp.ne.s32.totalorder %s1779_s22, %s1775_s21  ;;  %p36_p12 = scmp.ge.s32.totalorder %s2655_s6, 2 }
  0x23   : > { %p75_p13 = scmp.ne.s32.totalorder %s1775_s21, %s1771_s20  ;;  %p76_p4 = scmp.eq.s32.totalorder %s1943_s10, 0 }
  0x24   : > { %p1956_p2 = por %p70_p0, %p69_p11  ;;  %s2657_s6 = smov (%p36_p12, %s2655_s6), 0 }
  0x25   : > { %2618 = sst [smem:[#allocation25_spill]] %s2657_s6  ;;  %p1963_p6 = por %p76_p4, %p75_p13 }
  0x26   : > { %p1970_p1 = por %p101_p3, %p76_p4  ;;  %s59_s20 = ssub.s32 %s1795_s25, %s2657_s6 }
  0x27   : > { %s175_s14 = sand.u32 1, %s1779_s22   ;;  %p60_p0 = scmp.eq.s32.totalorder %s59_s20, 0 }
  0x28   : > { %s1254_s15 = sshll.u32 %s175_s14, 7  ;;  %s1276_s16 = sshll.u32 %s1795_s25, 7 }
  0x29   : > { %s1979_s5 = scalar_select %p60_p0, %s1779_s22, %s62_s11  }
  0x2a   : > { %s184_s2 = scalar_lea.hbm %s2592_s1, %s1276_s16  ;;  %s179_s24 = scalar_lea.vmem [#allocation8], %s1254_s15 }
  0x2b   : > { %2621 = sst [smem:[#allocation26_spill]] %s1979_s5  ;;  %s185_s27 = sshll.u32 %s184_s2, 4  ;;  %s186_s27 = int_to_ptr.hbm [resolvable:$true] %s185_s27 }
  0x2c   : > { %s187_s7 = sshll.u32 %s179_s24, 4  ;;  %p1346_p3 = pnand %p1355_p5, %p1956_p2  ;;  %s188_s7 = int_to_ptr.vmem [resolvable:$true] %s187_s7 }
  0x2d   : > { %s227_s20 = scalar_lea.hbm %s2594_s3, %s1276_s16  ;;  %s222_s25 = scalar_lea.vmem [#allocation13], %s1254_s15 }
  0x2e   : > { %s230_s11 = sshll.u32 %s222_s25, 4  ;;  %s228_s5 = sshll.u32 %s227_s20, 4  ;;  %s229_s5 = int_to_ptr.hbm [resolvable:$true] %s228_s5  ;;  %s231_s11 = int_to_ptr.vmem [resolvable:$true] %s230_s11 }
  0x2f   : > { %s176_s22 = scalar_lea.sflag [#allocation9], %s175_s14  ;;  %s2622_s19 = smov 8  }
  0x30   : > { %s2623_s8 = smov 128   ;;  %242 = sbr.rel (%p1938_p10) target bundleno = 1309 (0x51d), region = 36 }
  0x31   : > { %1348 = dma.hbm_to_vmem [thread:$0]  (!%p1346_p3), %s186_s27, 2048, %s188_s7, %s176_s22, %s2623_s8, %s2623_s8, %s2622_s19  }
  0x32   : > { %1354 = dma.hbm_to_vmem [thread:$0]  (!%p1346_p3), %s229_s5, 2048, %s231_s11, %s1933_s29, %s2623_s8, %s2623_s8, %s2622_s19  }
  0x33   : > { %s244_s2 = sand.u32 (!%p1938_p10), 1, %s1775_s21  }
  0x34   : > { %s1263_s24 = sshll.u32 (!%p1938_p10), %s244_s2, 7  ;;  %s245_s25 = scalar_lea.sflag (!%p1938_p10), [#allocation9], %s244_s2 }
  0x35   : > { %s2001_s9 = scalar_lea.vmem [#allocation8], %s1263_s24 }
  0x36   : > { %1742 = dma.done.wait (%p1963_p6), %s245_s25, 2048  }
  0x37   : > { %1744 = vsyncadd (%p1963_p6), %s245_s25, 4294965248  ;;  %s254_s22 = sand.u32 1, %s1943_s10   ;;  %s256_s19 = sand.u32 1, %s1763_s18  }
  0x38   : > { %s1264_s27 = sshll.u32 %s256_s19, 7  ;;  %s255_s7 = scalar_lea.sflag [#allocation12], %s254_s22 }
  0x39   : > { %s2009_s29 = scalar_lea.vmem [#allocation11], %s1264_s27 }
  0x3a   : > { %1746 = dma.done.wait (%p1970_p1), %s255_s7, 2048  }
  0x3b   : > { %1748 = vsyncadd (%p1970_p1), %s255_s7, 4294965248  ;;  %s2015_s30 = scalar_lea.vmem [#allocation13], %s1263_s24 }
  0x3c   : > { %1750 = dma.done.wait (%p1963_p6), %s255_s7, 2048  }
  0x3d   : > { %1752 = vsyncadd (%p1963_p6), %s255_s7, 4294965248  ;;  %p302_p5 = scmp.eq.s32.totalorder %s1787_s0, 0  ;;  %p303_p7 = scmp.eq.s32.totalorder %s1783_s23, 0 }
  0x3e   : > { %s2023_s6 = sld [smem:[#allocation7]]  ;;  %s1804_s12 = smov 0.0  }
  0x3f   : > { %p304_p8 = pnand %p303_p7, %p302_p5  ;;  %p1266_p9 = scmp.ne.s32.totalorder %s1783_s23, 0 }
  0x41   : > { %1339 = sst [smem:[#allocation6]] (!%p304_p8), %s1804_s12  ;;  %314 = sbr.rel (%p1266_p9) target bundleno = 287 (0x11f), region = 56 }
  0x42   : > { %1340 = sst [smem:[#allocation6 + $0x1]] (!%p304_p8), %s1804_s12 }
  0x43   : > { %s1267_s13 = sld [smem:[#allocation6 + $0x1]] (!%p1266_p9) }
  0x46   : > { %vm315_vm0 = vcmask 7168   ;;  %v1805_v0 = vmov -inf   ;;  %v348_v1 = vld [vmem:[%s2001_s9] sm:$0xff]  ;;  %v349_v2 = vld [vmem:[%s2001_s9 + $0x8] sm:$0xff]  ;;  %v350_v3 = vld [vmem:[%s2001_s9 + $0x10] sm:$0xff]  ;;  %v1806_v32 = vmov 0.0  }
  0x47   : > { %316 = vst.msk [vmem:[#allocation2] sm:$0xff] %vm315_vm0, %v1805_v0  ;;  %v351_v4 = vld [vmem:[%s2001_s9 + $0x18] sm:$0xff]  ;;  %v364_v5 = vld [vmem:[%s2015_s30] sm:$0xff]  ;;  %v365_v6 = vld [vmem:[%s2015_s30 + $0x8] sm:$0xff] }
  0x48   : > { %317 = vst.msk [vmem:[#allocation2 + $0x8] sm:$0xff] %vm315_vm0, %v1805_v0  ;;  %v366_v7 = vld [vmem:[%s2015_s30 + $0x10] sm:$0xff]  ;;  %v367_v8 = vld [vmem:[%s2015_s30 + $0x18] sm:$0xff]  ;;  %v380_v9 = vmul.f32 %v364_v5, %v348_v1  ;;  %v381_v10 = vmul.f32 %v365_v6, %v349_v2  ;;  %v352_v11 = vld [vmem:[%s2001_s9 + $0x20] sm:$0xff] }
  0x49   : > { %318 = vst.msk [vmem:[#allocation2 + $0x10] sm:$0xff] %vm315_vm0, %v1805_v0  ;;  %v368_v12 = vld [vmem:[%s2015_s30 + $0x20] sm:$0xff]  ;;  %v382_v13 = vmul.f32 %v366_v7, %v350_v3  ;;  %v383_v14 = vmul.f32 %v367_v8, %v351_v4  ;;  %v353_v16 = vld [vmem:[%s2001_s9 + $0x28] sm:$0xff]  ;;  %v354_v20 = vld [vmem:[%s2001_s9 + $0x30] sm:$0xff] }
  0x4a   : > { %319 = vst.msk [vmem:[#allocation2 + $0x18] sm:$0xff] %vm315_vm0, %v1805_v0  ;;  %v396_v15 = vadd.f32 %v381_v10, %v380_v9  ;;  %v369_v17 = vld [vmem:[%s2015_s30 + $0x28] sm:$0xff]  ;;  %v384_v18 = vmul.f32 %v368_v12, %v352_v11  ;;  %v370_v21 = vld [vmem:[%s2015_s30 + $0x30] sm:$0xff]  ;;  %v355_v24 = vld [vmem:[%s2001_s9 + $0x38] sm:$0xff] }
  0x4b   : > { %320 = vst.msk [vmem:[#allocation2 + $0x20] sm:$0xff] %vm315_vm0, %v1805_v0  ;;  %v385_v22 = vmul.f32 %v369_v17, %v353_v16  ;;  %v371_v25 = vld [vmem:[%s2015_s30 + $0x38] sm:$0xff]  ;;  %v386_v26 = vmul.f32 %v370_v21, %v354_v20  ;;  %v356_v28 = vld [vmem:[%s2001_s9 + $0x40] sm:$0xff]  ;;  %v357_v33 = vld [vmem:[%s2001_s9 + $0x48] sm:$0xff] }
  0x4c   : > { %321 = vst.msk [vmem:[#allocation2 + $0x28] sm:$0xff] %vm315_vm0, %v1805_v0  ;;  %v397_v19 = vadd.f32 %v396_v15, %v382_v13  ;;  %v372_v29 = vld [vmem:[%s2015_s30 + $0x40] sm:$0xff]  ;;  %v387_v30 = vmul.f32 %v371_v25, %v355_v24  ;;  %v373_v34 = vld [vmem:[%s2015_s30 + $0x48] sm:$0xff]  ;;  %v358_v37 = vld [vmem:[%s2001_s9 + $0x50] sm:$0xff] }
  0x4d   : > { %322 = vst.msk [vmem:[#allocation2 + $0x30] sm:$0xff] %vm315_vm0, %v1805_v0  ;;  %v388_v35 = vmul.f32 %v372_v29, %v356_v28  ;;  %v374_v38 = vld [vmem:[%s2015_s30 + $0x50] sm:$0xff]  ;;  %v389_v39 = vmul.f32 %v373_v34, %v357_v33  ;;  %v359_v41 = vld [vmem:[%s2001_s9 + $0x58] sm:$0xff]  ;;  %v360_v45 = vld [vmem:[%s2001_s9 + $0x60] sm:$0xff] }
  0x4e   : > { %323 = vst.msk [vmem:[#allocation2 + $0x38] sm:$0xff] %vm315_vm0, %v1805_v0  ;;  %v398_v23 = vadd.f32 %v397_v19, %v383_v14  ;;  %v375_v42 = vld [vmem:[%s2015_s30 + $0x58] sm:$0xff]  ;;  %v390_v43 = vmul.f32 %v374_v38, %v358_v37  ;;  %v376_v46 = vld [vmem:[%s2015_s30 + $0x60] sm:$0xff]  ;;  %v361_v49 = vld [vmem:[%s2001_s9 + $0x68] sm:$0xff] }
  0x4f   : > { %324 = vst.msk [vmem:[#allocation2 + $0x40] sm:$0xff] %vm315_vm0, %v1805_v0  ;;  %v391_v47 = vmul.f32 %v375_v42, %v359_v41  ;;  %v377_v50 = vld [vmem:[%s2015_s30 + $0x68] sm:$0xff]  ;;  %v392_v51 = vmul.f32 %v376_v46, %v360_v45  ;;  %v362_v53 = vld [vmem:[%s2001_s9 + $0x70] sm:$0xff]  ;;  %v363_v57 = vld [vmem:[%s2001_s9 + $0x78] sm:$0xff] }
  0x50   : > { %325 = vst.msk [vmem:[#allocation2 + $0x48] sm:$0xff] %vm315_vm0, %v1805_v0  ;;  %v399_v27 = vadd.f32 %v398_v23, %v384_v18  ;;  %v378_v54 = vld [vmem:[%s2015_s30 + $0x70] sm:$0xff]  ;;  %v393_v55 = vmul.f32 %v377_v50, %v361_v49  ;;  %v379_v58 = vld [vmem:[%s2015_s30 + $0x78] sm:$0xff] }
  0x51   : > { %326 = vst.msk [vmem:[#allocation2 + $0x50] sm:$0xff] %vm315_vm0, %v1805_v0  ;;  %v394_v59 = vmul.f32 %v378_v54, %v362_v53  ;;  %v395_v61 = vmul.f32 %v379_v58, %v363_v57 }
  0x52   : > { %327 = vst.msk [vmem:[#allocation2 + $0x58] sm:$0xff] %vm315_vm0, %v1805_v0  ;;  %v400_v31 = vadd.f32 %v399_v27, %v385_v22 }
  0x53   : > { %328 = vst.msk [vmem:[#allocation2 + $0x60] sm:$0xff] %vm315_vm0, %v1805_v0 }
  0x54   : > { %329 = vst.msk [vmem:[#allocation2 + $0x68] sm:$0xff] %vm315_vm0, %v1805_v0  ;;  %v401_v36 = vadd.f32 %v400_v31, %v386_v26 }
  0x55   : > { %330 = vst.msk [vmem:[#allocation2 + $0x70] sm:$0xff] %vm315_vm0, %v1805_v0 }
  0x56   : > { %331 = vst.msk [vmem:[#allocation2 + $0x78] sm:$0xff] %vm315_vm0, %v1805_v0  ;;  %v402_v40 = vadd.f32 %v401_v36, %v387_v30 }
  0x57   : > { %332 = vst.msk [vmem:[#allocation3] sm:$0xff] %vm315_vm0, %v1806_v32 }
  0x58   : > { %333 = vst.msk [vmem:[#allocation3 + $0x8] sm:$0xff] %vm315_vm0, %v1806_v32  ;;  %v403_v44 = vadd.f32 %v402_v40, %v388_v35 }
  0x59   : > { %334 = vst.msk [vmem:[#allocation3 + $0x10] sm:$0xff] %vm315_vm0, %v1806_v32 }
  0x5a   : > { %335 = vst.msk [vmem:[#allocation3 + $0x18] sm:$0xff] %vm315_vm0, %v1806_v32  ;;  %v404_v48 = vadd.f32 %v403_v44, %v389_v39 }
  0x5b   : > { %336 = vst.msk [vmem:[#allocation3 + $0x20] sm:$0xff] %vm315_vm0, %v1806_v32 }
  0x5c   : > { %337 = vst.msk [vmem:[#allocation3 + $0x28] sm:$0xff] %vm315_vm0, %v1806_v32  ;;  %v405_v52 = vadd.f32 %v404_v48, %v390_v43 }
  0x5d   : > { %338 = vst.msk [vmem:[#allocation3 + $0x30] sm:$0xff] %vm315_vm0, %v1806_v32 }
  0x5e   : > { %339 = vst.msk [vmem:[#allocation3 + $0x38] sm:$0xff] %vm315_vm0, %v1806_v32  ;;  %v406_v56 = vadd.f32 %v405_v52, %v391_v47 }
  0x5f   : > { %340 = vst.msk [vmem:[#allocation3 + $0x40] sm:$0xff] %vm315_vm0, %v1806_v32 }
  0x60   : > { %341 = vst.msk [vmem:[#allocation3 + $0x48] sm:$0xff] %vm315_vm0, %v1806_v32  ;;  %v407_v60 = vadd.f32 %v406_v56, %v392_v51 }
  0x61   : > { %342 = vst.msk [vmem:[#allocation3 + $0x50] sm:$0xff] %vm315_vm0, %v1806_v32 }
  0x62   : > { %343 = vst.msk [vmem:[#allocation3 + $0x58] sm:$0xff] %vm315_vm0, %v1806_v32  ;;  %v408_v62 = vadd.f32 %v407_v60, %v393_v55 }
  0x63   : > { %344 = vst.msk [vmem:[#allocation3 + $0x60] sm:$0xff] %vm315_vm0, %v1806_v32 }
  0x64   : > { %345 = vst.msk [vmem:[#allocation3 + $0x68] sm:$0xff] %vm315_vm0, %v1806_v32  ;;  %v409_v63 = vadd.f32 %v408_v62, %v394_v59 }
  0x65   : > { %346 = vst.msk [vmem:[#allocation3 + $0x70] sm:$0xff] %vm315_vm0, %v1806_v32 }
  0x66   : > { %347 = vst.msk [vmem:[#allocation3 + $0x78] sm:$0xff] %vm315_vm0, %v1806_v32  ;;  %v410_v0 = vadd.f32 %v409_v63, %v395_v61 }
  0x68   : > { %411 = vadd.xlane.f32.xlu0 %v410_v0 }
  0xdb   : > { %v412_v1 = vpop.xlane.xlu0 %411 }
  0xdc   : > { %v413_v2 = vrot.slane %v412_v1, 4 }
  0xde   : > { %v414_v3 = vadd.f32 %v413_v2, %v412_v1 }
  0xe0   : > { %v415_v4 = vrot.slane %v414_v3, 2 }
  0xe2   : > { %v416_v5 = vadd.f32 %v415_v4, %v414_v3 }
  0xe4   : > { %v417_v6 = vrot.slane %v416_v5, 1 }
  0xe6   : > { %v418_v7 = vadd.f32 %v417_v6, %v416_v5 }
  0xe8   : > { %1326 = vpush %v418_v7 }
 0x119   : > { %s1327_s28 = spop %1326 }
 0x11a   : > { %s421_s14 = smul.f32 %s1327_s28, %s2023_s6 }
 0x11c   : > { %s422_s15 = sadd.f32 %s1267_s13, %s421_s14 }
 0x11e   : > { %424 = sst [smem:[#allocation6 + $0x1]] %s422_s15 }
 0x11f PF: > { %p1268_p10 = scmp.ne.s32.totalorder %s1787_s0, 0 }
 0x120   : > { %s428_s16 = scalar_lea.vmem (!%p1268_p10), [#allocation4], %s1783_s23  ;;  %s430_s5 = scalar_lea.vmem (!%p1268_p10), [#allocation5], %s1783_s23 }
 0x121   : > { %427 = sbr.rel (%p1268_p10) target bundleno = 297 (0x129), region = 60 }
 0x126   : > { %v1807_v8 = vmov -inf   ;;  %v1808_v9 = vmov 0.0  }
 0x127   : > { %429 = vst [vmem:[%s428_s16] sm:$0x1] %v1807_v8 }
 0x128   : > { %431 = vst [vmem:[%s430_s5] sm:$0x1] %v1808_v9 }
 0x129 PF: > { %v463_v10 = vld [vmem:[%s2009_s29 + $0x78] sm:$0xff]  ;;  %v462_v11 = vld [vmem:[%s2009_s29 + $0x70] sm:$0xff]  ;;  %v461_v12 = vld [vmem:[%s2009_s29 + $0x68] sm:$0xff]  ;;  %v529_v42 = vstv %s2023_s6  ;;  %s899_s17 = scalar_lea.vmem [#allocation4], %s1783_s23  ;;  %s974_s20 = scalar_lea.vmem [#allocation5], %s1783_s23  ;;  %vm866_vm1 = vcmask 7168  }
 0x12a   : > { %464 = vmatpush.msra.mxu0 %v463_v10  ;;  %1278 = vmatpush.msra.mxu1 %v463_v10  ;;  %v460_v13 = vld [vmem:[%s2009_s29 + $0x60] sm:$0xff]  ;;  %v459_v14 = vld [vmem:[%s2009_s29 + $0x58] sm:$0xff]  ;;  %v458_v15 = vld [vmem:[%s2009_s29 + $0x50] sm:$0xff]  ;;  %p1269_p11 = scmp.ne.s32.totalorder %s1783_s23, 1 }
 0x12b   : > { %1279 = vmatpush.msra.mxu2 %v463_v10  ;;  %1280 = vmatpush.msra.mxu3 %v463_v10  ;;  %v457_v16 = vld [vmem:[%s2009_s29 + $0x48] sm:$0xff]  ;;  %v456_v17 = vld [vmem:[%s2009_s29 + $0x40] sm:$0xff]  ;;  %v455_v18 = vld [vmem:[%s2009_s29 + $0x38] sm:$0xff]  ;;  %s1008_s23 = sld [smem:[#allocation6]] (!%p1269_p11)  ;;  %p1270_p12 = scmp.ne.s32.totalorder (!%p1269_p11), %s1787_s0, 1 }
 0x12c   : > { %465 = vmatpush.msra.mxu0 %v462_v11  ;;  %1281 = vmatpush.msra.mxu1 %v462_v11  ;;  %v454_v19 = vld [vmem:[%s2009_s29 + $0x30] sm:$0xff]  ;;  %v453_v20 = vld [vmem:[%s2009_s29 + $0x28] sm:$0xff]  ;;  %v452_v21 = vld [vmem:[%s2009_s29 + $0x20] sm:$0xff] }
 0x12d   : > { %1282 = vmatpush.msra.mxu2 %v462_v11  ;;  %1283 = vmatpush.msra.mxu3 %v462_v11  ;;  %v451_v22 = vld [vmem:[%s2009_s29 + $0x18] sm:$0xff]  ;;  %v450_v23 = vld [vmem:[%s2009_s29 + $0x10] sm:$0xff]  ;;  %v449_v24 = vld [vmem:[%s2009_s29 + $0x8] sm:$0xff] }
 0x12e   : > { %466 = vmatpush.msra.mxu0 %v461_v12  ;;  %1284 = vmatpush.msra.mxu1 %v461_v12  ;;  %v448_v25 = vld [vmem:[%s2009_s29] sm:$0xff]  ;;  %v433_v30 = vld [vmem:[%s2001_s9 + $0x8] sm:$0xff]  ;;  %v434_v34 = vld [vmem:[%s2001_s9 + $0x10] sm:$0xff] }
 0x12f   : > { %1285 = vmatpush.msra.mxu2 %v461_v12  ;;  %1286 = vmatpush.msra.mxu3 %v461_v12  ;;  %v432_v26 = vld [vmem:[%s2001_s9] sm:$0xff]  ;;  %v441_v31 = vld [vmem:[%s2001_s9 + $0x48] sm:$0xff]  ;;  %v442_v35 = vld [vmem:[%s2001_s9 + $0x50] sm:$0xff] }
 0x130   : > { %467 = vmatpush.msra.mxu0 %v460_v13  ;;  %1287 = vmatpush.msra.mxu1 %v460_v13  ;;  %v436_v27 = vld [vmem:[%s2001_s9 + $0x20] sm:$0xff]  ;;  %v437_v32 = vld [vmem:[%s2001_s9 + $0x28] sm:$0xff]  ;;  %v438_v36 = vld [vmem:[%s2001_s9 + $0x30] sm:$0xff] }
 0x131   : > { %1288 = vmatpush.msra.mxu2 %v460_v13  ;;  %1289 = vmatpush.msra.mxu3 %v460_v13  ;;  %v440_v28 = vld [vmem:[%s2001_s9 + $0x40] sm:$0xff]  ;;  %v445_v33 = vld [vmem:[%s2001_s9 + $0x68] sm:$0xff]  ;;  %v446_v37 = vld [vmem:[%s2001_s9 + $0x70] sm:$0xff] }
 0x132   : > { %468 = vmatpush.msra.mxu0 %v459_v14  ;;  %1290 = vmatpush.msra.mxu1 %v459_v14  ;;  %v444_v29 = vld [vmem:[%s2001_s9 + $0x60] sm:$0xff]  ;;  %v435_v38 = vld [vmem:[%s2001_s9 + $0x18] sm:$0xff] }
 0x133   : > { %1291 = vmatpush.msra.mxu2 %v459_v14  ;;  %1292 = vmatpush.msra.mxu3 %v459_v14  ;;  %v443_v39 = vld [vmem:[%s2001_s9 + $0x58] sm:$0xff] }
 0x134   : > { %469 = vmatpush.msra.mxu0 %v458_v15  ;;  %1293 = vmatpush.msra.mxu1 %v458_v15  ;;  %v439_v40 = vld [vmem:[%s2001_s9 + $0x38] sm:$0xff] }
 0x135   : > { %1294 = vmatpush.msra.mxu2 %v458_v15  ;;  %1295 = vmatpush.msra.mxu3 %v458_v15  ;;  %v447_v41 = vld [vmem:[%s2001_s9 + $0x78] sm:$0xff] }
 0x136   : > { %470 = vmatpush.msra.mxu0 %v457_v16  ;;  %1296 = vmatpush.msra.mxu1 %v457_v16 }
 0x137   : > { %1297 = vmatpush.msra.mxu2 %v457_v16  ;;  %1298 = vmatpush.msra.mxu3 %v457_v16 }
 0x138   : > { %471 = vmatpush.msra.mxu0 %v456_v17  ;;  %1299 = vmatpush.msra.mxu1 %v456_v17 }
 0x139   : > { %1300 = vmatpush.msra.mxu2 %v456_v17  ;;  %1301 = vmatpush.msra.mxu3 %v456_v17 }
 0x13a   : > { %472 = vmatpush.msra.mxu0 %v455_v18  ;;  %1302 = vmatpush.msra.mxu1 %v455_v18 }
 0x13b   : > { %1303 = vmatpush.msra.mxu2 %v455_v18  ;;  %1304 = vmatpush.msra.mxu3 %v455_v18 }
 0x13c   : > { %473 = vmatpush.msra.mxu0 %v454_v19  ;;  %1305 = vmatpush.msra.mxu1 %v454_v19 }
 0x13d   : > { %1306 = vmatpush.msra.mxu2 %v454_v19  ;;  %1307 = vmatpush.msra.mxu3 %v454_v19 }
 0x13e   : > { %474 = vmatpush.msra.mxu0 %v453_v20  ;;  %1308 = vmatpush.msra.mxu1 %v453_v20 }
 0x13f   : > { %1309 = vmatpush.msra.mxu2 %v453_v20  ;;  %1310 = vmatpush.msra.mxu3 %v453_v20 }
 0x140   : > { %475 = vmatpush.msra.mxu0 %v452_v21  ;;  %1311 = vmatpush.msra.mxu1 %v452_v21 }
 0x141   : > { %1312 = vmatpush.msra.mxu2 %v452_v21  ;;  %1313 = vmatpush.msra.mxu3 %v452_v21 }
 0x142   : > { %476 = vmatpush.msra.mxu0 %v451_v22  ;;  %1314 = vmatpush.msra.mxu1 %v451_v22 }
 0x143   : > { %1315 = vmatpush.msra.mxu2 %v451_v22  ;;  %1316 = vmatpush.msra.mxu3 %v451_v22 }
 0x144   : > { %477 = vmatpush.msra.mxu0 %v450_v23  ;;  %1317 = vmatpush.msra.mxu1 %v450_v23 }
 0x145   : > { %1318 = vmatpush.msra.mxu2 %v450_v23  ;;  %1319 = vmatpush.msra.mxu3 %v450_v23 }
 0x146   : > { %478 = vmatpush.msra.mxu0 %v449_v24  ;;  %1320 = vmatpush.msra.mxu1 %v449_v24 }
 0x147   : > { %1321 = vmatpush.msra.mxu2 %v449_v24  ;;  %1322 = vmatpush.msra.mxu3 %v449_v24 }
 0x148   : > { %479 = vmatpush.msra.mxu0 %v448_v25  ;;  %1323 = vmatpush.msra.mxu1 %v448_v25 }
 0x149   : > { %1324 = vmatpush.msra.mxu2 %v448_v25  ;;  %480 = vmatmul.f32.vlgmr.msra.gmra.mxu0 %v432_v26 }
 0x14a   : > { %492 = vmatmul.f32.vlgmr.msra.gmra.mxu1 %v436_v27  ;;  %504 = vmatmul.f32.vlgmr.msra.gmra.mxu2 %v440_v28 }
 0x14b   : > { %1325 = vmatpush.msra.mxu3 %v448_v25 }
 0x14c   : > { %516 = vmatmul.f32.vlgmr.msra.gmra.mxu3 %v444_v29 }
 0x151   : > { %483 = vmatmul.f32.gmra.mxu0 %v433_v30 }
 0x152   : > { %507 = vmatmul.f32.gmra.mxu2 %v441_v31  ;;  %495 = vmatmul.f32.gmra.mxu1 %v437_v32  ;;  %v2191_v31 = vld [vmem:[%s899_s17] sm:$0x1] }
 0x154   : > { %519 = vmatmul.f32.gmra.mxu3 %v445_v33 }
 0x159   : > { %486 = vmatmul.f32.gmra.mxu0 %v434_v34 }
 0x15a   : > { %510 = vmatmul.f32.gmra.mxu2 %v442_v35  ;;  %498 = vmatmul.f32.gmra.mxu1 %v438_v36 }
 0x15c   : > { %522 = vmatmul.f32.gmra.mxu3 %v446_v37 }
 0x161   : > { %489 = vmatmul.f32.gmra.mxu0 %v435_v38 }
 0x162   : > { %513 = vmatmul.f32.gmra.mxu2 %v443_v39  ;;  %501 = vmatmul.f32.gmra.mxu1 %v439_v40 }
 0x164   : > { %525 = vmatmul.f32.gmra.mxu3 %v447_v41 }
 0x1c6   : > { %v481_v43 = vpop.f32.mrf.mxu0 }
 0x1c7   : > { %v2127_v44 = vmul.f32 %v529_v42, %v481_v43  ;;  %v493_v45 = vpop.f32.mrf.mxu1 }
 0x1c8   : > { %v2129_v46 = vmul.f32 %v529_v42, %v493_v45 }
 0x1c9   : > { %562 = vmax.xlane.f32.xlu0 %v2127_v44 }
 0x1ca   : > { %570 = vmax.xlane.f32.xlu2 %v2129_v46  ;;  %v901_v9 = vmax.f32 %v2127_v44, %v2129_v46 }
 0x1cd   : > { %v505_v47 = vpop.f32.mrf.mxu2 }
 0x1ce   : > { %v484_v48 = vpop.f32.mrf.mxu0  ;;  %v2133_v51 = vmul.f32 %v529_v42, %v505_v47 }
 0x1cf   : > { %v517_v49 = vpop.f32.mrf.mxu3  ;;  %v496_v50 = vpop.f32.mrf.mxu1  ;;  %v2139_v57 = vmul.f32 %v529_v42, %v484_v48 }
 0x1d0   : > { %v2135_v52 = vmul.f32 %v529_v42, %v517_v49  ;;  %v2143_v59 = vmul.f32 %v529_v42, %v496_v50  ;;  %v905_v14 = vmax.f32 %v901_v9, %v2133_v51 }
 0x1d2   : > { %586 = vmax.xlane.f32.xlu0 %v2135_v52  ;;  %578 = vmax.xlane.f32.xlu2 %v2133_v51  ;;  %v902_v0 = vmax.f32 %v2139_v57, %v2143_v59  ;;  %v909_v21 = vmax.f32 %v905_v14, %v2135_v52 }
 0x1d5   : > { %v508_v53 = vpop.f32.mrf.mxu2 }
 0x1d6   : > { %v487_v54 = vpop.f32.mrf.mxu0  ;;  %v2154_v1 = vmul.f32 %v529_v42, %v508_v53 }
 0x1d7   : > { %v520_v55 = vpop.f32.mrf.mxu3  ;;  %v499_v56 = vpop.f32.mrf.mxu1  ;;  %v2148_v60 = vmul.f32 %v529_v42, %v487_v54 }
 0x1d8   : > { %v2141_v58 = vmul.f32 %v529_v42, %v520_v55  ;;  %v2150_v61 = vmul.f32 %v529_v42, %v499_v56  ;;  %v906_v10 = vmax.f32 %v902_v0, %v2154_v1 }
 0x1da   : > { %564 = vmax.xlane.f32.xlu0 %v2139_v57  ;;  %588 = vmax.xlane.f32.xlu1 %v2141_v58  ;;  %v903_v4 = vmax.f32 %v2148_v60, %v2150_v61  ;;  %v910_v17 = vmax.f32 %v906_v10, %v2141_v58 }
 0x1db   : > { %572 = vmax.xlane.f32.xlu2 %v2143_v59 }
 0x1dc   : > { %v913_v23 = vmax.f32 %v909_v21, %v910_v17 }
 0x1dd   : > { %v511_v62 = vpop.f32.mrf.mxu2 }
 0x1de   : > { %v490_v63 = vpop.f32.mrf.mxu0  ;;  %v2158_v5 = vmul.f32 %v529_v42, %v511_v62 }
 0x1df   : > { %v523_v2 = vpop.f32.mrf.mxu3  ;;  %v502_v3 = vpop.f32.mrf.mxu1  ;;  %v2160_v6 = vmul.f32 %v529_v42, %v490_v63 }
 0x1e0   : > { %v2162_v7 = vmul.f32 %v529_v42, %v502_v3  ;;  %v2164_v8 = vmul.f32 %v529_v42, %v523_v2  ;;  %v907_v11 = vmax.f32 %v903_v4, %v2158_v5 }
 0x1e2   : > { %580 = vmax.xlane.f32.xlu0 %v2154_v1  ;;  %566 = vmax.xlane.f32.xlu1 %v2148_v60  ;;  %v904_v12 = vmax.f32 %v2160_v6, %v2162_v7  ;;  %v911_v18 = vmax.f32 %v907_v11, %v2164_v8 }
 0x1e3   : > { %590 = vmax.xlane.f32.xlu2 %v2164_v8 }
 0x1e5   : > { %v514_v13 = vpop.f32.mrf.mxu2 }
 0x1e6   : > { %v2176_v15 = vmul.f32 %v529_v42, %v514_v13 }
 0x1e7   : > { %v526_v16 = vpop.f32.mrf.mxu3 }
 0x1e8   : > { %v908_v19 = vmax.f32 %v904_v12, %v2176_v15  ;;  %v2181_v20 = vmul.f32 %v529_v42, %v526_v16 }
 0x1ea   : > { %v912_v22 = vmax.f32 %v908_v19, %v2181_v20  ;;  %574 = vmax.xlane.f32.xlu0 %v2150_v61  ;;  %582 = vmax.xlane.f32.xlu1 %v2158_v5 }
 0x1eb   : > { %584 = vmax.xlane.f32.xlu2 %v2176_v15 }
 0x1ec   : > { %v914_v24 = vmax.f32 %v911_v18, %v912_v22 }
 0x1ee   : > { %v915_v25 = vmax.f32 %v913_v23, %v914_v24 }
 0x1f0   : > { %v916_v26 = vrot.slane %v915_v25, 4 }
 0x1f2   : > { %v917_v27 = vmax.f32 %v915_v25, %v916_v26  ;;  %592 = vmax.xlane.f32.xlu0 %v2181_v20  ;;  %568 = vmax.xlane.f32.xlu1 %v2160_v6 }
 0x1f4   : > { %v918_v28 = vrot.slane %v917_v27, 2 }
 0x1f6   : > { %v919_v29 = vmax.f32 %v917_v27, %v918_v28 }
 0x1f8   : > { %v920_v30 = vrot.slane %v919_v29, 1 }
 0x1fa   : > { %v921_v32 = vmax.f32 %v919_v29, %v920_v30  ;;  %576 = vmax.xlane.f32.xlu1 %v2162_v7 }
 0x1fc   : > { %v2195_v33 = vmax.f32 %v2191_v31, %v921_v32 }
 0x1fe   : > { %v2198_v34 = vperm.slane %v2195_v33, 0  ;;  %1003 = vst [vmem:[%s899_s17] sm:$0x1] %v2195_v33 }
 0x200   : > { %v926_v35 = vsub.f32 %v2127_v44, %v2198_v34  ;;  %v927_v36 = vsub.f32 %v2139_v57, %v2198_v34  ;;  %v928_v37 = vsub.f32 %v2148_v60, %v2198_v34  ;;  %v929_v38 = vsub.f32 %v2160_v6, %v2198_v34 }
 0x201   : > { %v930_v41 = vsub.f32 %v2129_v46, %v2198_v34  ;;  %v931_v43 = vsub.f32 %v2143_v59, %v2198_v34  ;;  %v932_v47 = vsub.f32 %v2150_v61, %v2198_v34  ;;  %v933_v49 = vsub.f32 %v2162_v7, %v2198_v34 }
 0x202   : > { %v942_v39 = vmul.f32 1.442695, %v926_v35  ;;  %v944_v40 = vmul.f32 1.442695, %v927_v36  ;;  %v946_v42 = vmul.f32 1.442695, %v928_v37  ;;  %v934_v55 = vsub.f32 %v2133_v51, %v2198_v34 }
 0x203   : > { %v948_v45 = vmul.f32 1.442695, %v929_v38  ;;  %v950_v48 = vmul.f32 1.442695, %v930_v41  ;;  %v952_v50 = vmul.f32 1.442695, %v931_v43  ;;  %v935_v0 = vsub.f32 %v2154_v1, %v2198_v34 }
 0x204   : > { %1459 = vpow2.f32 %v942_v39  ;;  %v954_v56 = vmul.f32 1.442695, %v932_v47  ;;  %v956_v2 = vmul.f32 1.442695, %v933_v49  ;;  %v936_v9 = vsub.f32 %v2158_v5, %v2198_v34 }
 0x205   : > { %1461 = vpow2.f32 %v944_v40  ;;  %v958_v10 = vmul.f32 1.442695, %v934_v55  ;;  %v937_v13 = vsub.f32 %v2176_v15, %v2198_v34  ;;  %v960_v14 = vmul.f32 1.442695, %v935_v0 }
 0x206   : > { %1463 = vpow2.f32 %v946_v42  ;;  %v938_v18 = vsub.f32 %v2135_v52, %v2198_v34  ;;  %v962_v19 = vmul.f32 1.442695, %v936_v9  ;;  %v939_v23 = vsub.f32 %v2141_v58, %v2198_v34 }
 0x207   : > { %1465 = vpow2.f32 %v948_v45  ;;  %v964_v24 = vmul.f32 1.442695, %v937_v13  ;;  %v940_v27 = vsub.f32 %v2164_v8, %v2198_v34  ;;  %v941_v32 = vsub.f32 %v2181_v20, %v2198_v34 }
 0x208   : > { %1467 = vpow2.f32 %v950_v48  ;;  %v966_v28 = vmul.f32 1.442695, %v938_v18  ;;  %v968_v35 = vmul.f32 1.442695, %v939_v23  ;;  %v1809_v49 = vmov 0   ;;  %v2255_v23 = vld [vmem:[#allocation2 + $0x60] sm:$0xff] }
 0x209   : > { %1469 = vpow2.f32 %v952_v50  ;;  %v970_v38 = vmul.f32 1.442695, %v940_v27  ;;  %v972_v41 = vmul.f32 1.442695, %v941_v32  ;;  %1456 = vset.pattern.permute.xlu1 %v1809_v49  ;;  %1457 = vset.pattern.permute.xlu0 %v1809_v49  ;;  %v976_v50 = vsub.f32 %v2191_v31, %v2195_v33  ;;  %v2236_v31 = vld [vmem:[#allocation2] sm:$0xff]  ;;  %v2275_v32 = vld [vmem:[#allocation2 + $0x8] sm:$0xff] }
 0x20a   : > { %v1460_v53 = vpop.eup %1459  ;;  %1471 = vpow2.f32 %v954_v56  ;;  %1458 = vset.pattern.permute.xlu2 %v1809_v49  ;;  %v2238_v33 = vld [vmem:[#allocation2 + $0x20] sm:$0xff]  ;;  %v2306_v49 = vld [vmem:[#allocation2 + $0x10] sm:$0xff] }
 0x20b   : > { %v1462_v54 = vpop.eup %1461  ;;  %1473 = vpow2.f32 %v956_v2 }
 0x20c   : > { %v980_v62 = vadd.f32 %v1462_v54, %v1460_v53  ;;  %v1464_v63 = vpop.eup %1463  ;;  %1475 = vpow2.f32 %v958_v10  ;;  %v975_v10 = vld [vmem:[%s974_s20] sm:$0x1] }
 0x20d   : > { %v1466_v4 = vpop.eup %1465  ;;  %1477 = vpow2.f32 %v960_v14 }
 0x20e   : > { %v981_v3 = vadd.f32 %v1464_v63, %v980_v62  ;;  %v1468_v12 = vpop.eup %1467  ;;  %1479 = vpow2.f32 %v962_v19  ;;  %v977_v62 = vmul.f32 1.442695, %v976_v50 }
 0x20f   : > { %v1470_v17 = vpop.eup %1469  ;;  %1481 = vpow2.f32 %v964_v24  ;;  %v2257_v24 = vld [vmem:[#allocation2 + $0x40] sm:$0xff] }
 0x210   : > { %v982_v11 = vadd.f32 %v1466_v4, %v981_v3  ;;  %v1472_v22 = vpop.eup %1471  ;;  %1483 = vpow2.f32 %v966_v28 }
 0x211   : > { %v1474_v26 = vpop.eup %1473  ;;  %1485 = vpow2.f32 %v968_v35  ;;  %v2277_v35 = vld [vmem:[#allocation2 + $0x68] sm:$0xff] }
 0x212   : > { %v983_v16 = vadd.f32 %v1468_v12, %v982_v11  ;;  %v1476_v30 = vpop.eup %1475  ;;  %1487 = vpow2.f32 %v970_v38 }
 0x213   : > { %v1478_v37 = vpop.eup %1477  ;;  %1489 = vpow2.f32 %v972_v41 }
 0x214   : > { %v984_v21 = vadd.f32 %v1470_v17, %v983_v16  ;;  %v1480_v40 = vpop.eup %1479  ;;  %1491 = vpow2.f32 %v977_v62 }
 0x215   : > { %v1482_v43 = vpop.eup %1481 }
 0x216   : > { %v985_v25 = vadd.f32 %v1472_v22, %v984_v21  ;;  %v1484_v47 = vpop.eup %1483 }
 0x217   : > { %v1486_v34 = vpop.eup %1485 }
 0x218   : > { %v986_v29 = vadd.f32 %v1474_v26, %v985_v25  ;;  %v1488_v54 = vpop.eup %1487 }
 0x219   : > { %v1490_v56 = vpop.eup %1489 }
 0x21a   : > { %v987_v36 = vadd.f32 %v1476_v30, %v986_v29  ;;  %v1492_v9 = vpop.eup %1491 }
 0x21b   : > { %v979_v12 = vmul.f32 %v1492_v9, %v975_v10  ;;  %v2337_v9 = vld [vmem:[#allocation2 + $0x58] sm:$0xff] }
 0x21c   : > { %v988_v39 = vadd.f32 %v1478_v37, %v987_v36  ;;  %v2279_v36 = vld [vmem:[#allocation2 + $0x28] sm:$0xff] }
 0x21e   : > { %v989_v42 = vadd.f32 %v1480_v40, %v988_v39 }
 0x220   : > { %v990_v45 = vadd.f32 %v1482_v43, %v989_v42 }
 0x222   : > { %v991_v48 = vadd.f32 %v1484_v47, %v990_v45 }
 0x224   : > { %v992_v53 = vadd.f32 %v1486_v34, %v991_v48  ;;  %v2304_v48 = vld [vmem:[#allocation2 + $0x48] sm:$0xff]  ;;  %v2308_v34 = vld [vmem:[#allocation2 + $0x70] sm:$0xff] }
 0x226   : > { %v993_v55 = vadd.f32 %v1488_v54, %v992_v53 }
 0x228   : > { %v994_v63 = vadd.f32 %v1490_v56, %v993_v55 }
 0x22a   : > { %v995_v0 = vrot.slane %v994_v63, 4 }
 0x22c   : > { %v996_v2 = vadd.f32 %v995_v0, %v994_v63 }
 0x22e   : > { %v997_v3 = vrot.slane %v996_v2, 2 }
 0x230   : > { %v998_v4 = vadd.f32 %v997_v3, %v996_v2  ;;  %v2333_v3 = vld [vmem:[#allocation2 + $0x30] sm:$0xff] }
 0x232   : > { %v999_v11 = vrot.slane %v998_v4, 1 }
 0x234   : > { %v1000_v13 = vadd.f32 %v999_v11, %v998_v4  ;;  %v2335_v4 = vld [vmem:[#allocation2 + $0x50] sm:$0xff] }
 0x236   : > { %v1001_v14 = vadd.f32 %v1000_v13, %v979_v12 }
 0x238   : > { %1002 = vst [vmem:[%s974_s20] sm:$0x1] %v1001_v14 }
 0x23c   : > { %v563_v16 = vpop.xlane.xlu0 %562 }
 0x23d   : > { %v2241_v17 = vmax.f32 %v2236_v31, %v563_v16  ;;  %v571_v18 = vpop.xlane.xlu2 %570 }
 0x23e   : > { %v2244_v19 = vmax.f32 %v2238_v33, %v571_v18 }
 0x23f   : > { %867 = vst.msk [vmem:[#allocation2] sm:$0xff] %vm866_vm1, %v2241_v17  ;;  %612 = vperm.xlu1 %1456, %v2241_v17  }
 0x240   : > { %871 = vst.msk [vmem:[#allocation2 + $0x20] sm:$0xff] %vm866_vm1, %v2244_v19 }
 0x245   : > { %v587_v25 = vpop.xlane.xlu0 %586  ;;  %v579_v26 = vpop.xlane.xlu2 %578 }
 0x246   : > { %v2260_v27 = vmax.f32 %v2255_v23, %v587_v25  ;;  %v2263_v28 = vmax.f32 %v2257_v24, %v579_v26 }
 0x247   : > { %632 = vperm.xlu1 %1456, %v2244_v19  }
 0x248   : > { %879 = vst.msk [vmem:[#allocation2 + $0x60] sm:$0xff] %vm866_vm1, %v2260_v27  ;;  %672 = vperm.xlu0 %1457, %v2260_v27  }
 0x249   : > { %875 = vst.msk [vmem:[#allocation2 + $0x40] sm:$0xff] %vm866_vm1, %v2263_v28 }
 0x24d   : > { %v565_v37 = vpop.xlane.xlu0 %564  ;;  %v589_v38 = vpop.xlane.xlu1 %588 }
 0x24e   : > { %v2282_v39 = vmax.f32 %v2275_v32, %v565_v37  ;;  %v2285_v40 = vmax.f32 %v2277_v35, %v589_v38  ;;  %v573_v41 = vpop.xlane.xlu2 %572  ;;  %v2363_v37 = vld [vmem:[#allocation2 + $0x78] sm:$0xff] }
 0x24f   : > { %652 = vperm.xlu1 %1456, %v2263_v28   ;;  %v2289_v42 = vmax.f32 %v2279_v36, %v573_v41  ;;  %v2365_v38 = vld [vmem:[#allocation2 + $0x18] sm:$0xff] }
 0x250   : > { %868 = vst.msk [vmem:[#allocation2 + $0x8] sm:$0xff] %vm866_vm1, %v2282_v39  ;;  %617 = vperm.xlu2 %1458, %v2282_v39  }
 0x251   : > { %880 = vst.msk [vmem:[#allocation2 + $0x68] sm:$0xff] %vm866_vm1, %v2285_v40 }
 0x252   : > { %872 = vst.msk [vmem:[#allocation2 + $0x28] sm:$0xff] %vm866_vm1, %v2289_v42 }
 0x255   : > { %v581_v50 = vpop.xlane.xlu0 %580  ;;  %v567_v53 = vpop.xlane.xlu1 %566 }
 0x256   : > { %v2311_v54 = vmax.f32 %v2304_v48, %v581_v50  ;;  %v2314_v55 = vmax.f32 %v2306_v49, %v567_v53  ;;  %v591_v56 = vpop.xlane.xlu2 %590 }
 0x257   : > { %v2317_v62 = vmax.f32 %v2308_v34, %v591_v56 }
 0x258   : > { %876 = vst.msk [vmem:[#allocation2 + $0x48] sm:$0xff] %vm866_vm1, %v2311_v54  ;;  %637 = vperm.xlu2 %1458, %v2289_v42   ;;  %657 = vperm.xlu0 %1457, %v2311_v54  }
 0x259   : > { %869 = vst.msk [vmem:[#allocation2 + $0x10] sm:$0xff] %vm866_vm1, %v2314_v55 }
 0x25a   : > { %881 = vst.msk [vmem:[#allocation2 + $0x70] sm:$0xff] %vm866_vm1, %v2317_v62 }
 0x25d   : > { %v575_v10 = vpop.xlane.xlu0 %574  ;;  %v583_v11 = vpop.xlane.xlu1 %582 }
 0x25e   : > { %v2340_v12 = vmax.f32 %v2333_v3, %v575_v10  ;;  %v2343_v13 = vmax.f32 %v2335_v4, %v583_v11  ;;  %v585_v14 = vpop.xlane.xlu2 %584 }
 0x25f   : > { %v2346_v16 = vmax.f32 %v2337_v9, %v585_v14  ;;  %v2384_v14 = vld [vmem:[#allocation2 + $0x38] sm:$0xff] }
 0x260   : > { %873 = vst.msk [vmem:[#allocation2 + $0x30] sm:$0xff] %vm866_vm1, %v2340_v12  ;;  %677 = vperm.xlu2 %1458, %v2285_v40   ;;  %622 = vperm.xlu0 %1457, %v2314_v55  }
 0x261   : > { %642 = vperm.xlu1 %1456, %v2340_v12   ;;  %877 = vst.msk [vmem:[#allocation2 + $0x50] sm:$0xff] %vm866_vm1, %v2343_v13 }
 0x262   : > { %878 = vst.msk [vmem:[#allocation2 + $0x58] sm:$0xff] %vm866_vm1, %v2346_v16 }
 0x265   : > { %v593_v41 = vpop.xlane.xlu0 %592  ;;  %v569_v50 = vpop.xlane.xlu1 %568 }
 0x266   : > { %v2368_v53 = vmax.f32 %v2363_v37, %v593_v41  ;;  %v2371_v56 = vmax.f32 %v2365_v38, %v569_v50 }
 0x268   : > { %882 = vst.msk [vmem:[#allocation2 + $0x78] sm:$0xff] %vm866_vm1, %v2368_v53  ;;  %687 = vperm.xlu0 %1457, %v2368_v53   ;;  %662 = vperm.xlu2 %1458, %v2343_v13  }
 0x269   : > { %682 = vperm.xlu1 %1456, %v2317_v62   ;;  %870 = vst.msk [vmem:[#allocation2 + $0x18] sm:$0xff] %vm866_vm1, %v2371_v56 }
 0x26d   : > { %v577_v41 = vpop.xlane.xlu1 %576 }
 0x26e   : > { %v2387_v50 = vmax.f32 %v2384_v14, %v577_v41 }
 0x270   : > { %627 = vperm.xlu2 %1458, %v2371_v56   ;;  %874 = vst.msk [vmem:[#allocation2 + $0x38] sm:$0xff] %vm866_vm1, %v2387_v50 }
 0x271   : > { %667 = vperm.xlu1 %1456, %v2346_v16  }
 0x278   : > { %647 = vperm.xlu2 %1458, %v2387_v50  }
 0x2aa   : > { %v618_v26 = vpop.permute.xlu2 %617 }
 0x2ab   : > { %v691_v30 = vsub.f32 %v2139_v57, %v618_v26 }
 0x2ad   : > { %v708_v22 = vmul.f32 1.442695, %v691_v30 }
 0x2b1   : > { %v613_v10 = vpop.permute.xlu1 %612 }
 0x2b2   : > { %v638_v45 = vpop.permute.xlu2 %637  ;;  %v690_v18 = vsub.f32 %v2127_v44, %v613_v10 }
 0x2b4   : > { %v706_v0 = vmul.f32 1.442695, %v690_v18 }
 0x2b6   : > { %1493 = vpow2.f32 %v706_v0 }
 0x2b9   : > { %v633_v41 = vpop.permute.xlu1 %632 }
 0x2ba   : > { %v678_v11 = vpop.permute.xlu2 %677  ;;  %v673_v63 = vpop.permute.xlu0 %672  ;;  %v694_v25 = vsub.f32 %v2129_v46, %v633_v41  ;;  %v695_v46 = vsub.f32 %v2143_v59, %v638_v45 }
 0x2bb   : > { %v702_v2 = vsub.f32 %v2135_v52, %v673_v63 }
 0x2bc   : > { %v1494_v47 = vpop.eup %1493  ;;  %v714_v43 = vmul.f32 1.442695, %v694_v25  ;;  %v716_v57 = vmul.f32 1.442695, %v695_v46  ;;  %v703_v46 = vsub.f32 %v2141_v58, %v678_v11 }
 0x2bd   : > { %v730_v29 = vmul.f32 1.442695, %v702_v2  ;;  %818 = vadd.xlane.f32.xlu2 %v1494_v47 }
 0x2be   : > { %1495 = vpow2.f32 %v714_v43 }
 0x2bf   : > { %1497 = vpow2.f32 %v730_v29 }
 0x2c0   : > { %1499 = vpow2.f32 %v708_v22 }
 0x2c1   : > { %v653_v21 = vpop.permute.xlu1 %652 }
 0x2c2   : > { %v663_v44 = vpop.permute.xlu2 %662  ;;  %v698_v0 = vsub.f32 %v2133_v51, %v653_v21 }
 0x2c3   : > { %v700_v63 = vsub.f32 %v2158_v5, %v663_v44 }
 0x2c4   : > { %v1496_v18 = vpop.eup %1495  ;;  %v722_v10 = vmul.f32 1.442695, %v698_v0 }
 0x2c5   : > { %826 = vadd.xlane.f32.xlu1 %v1496_v18  ;;  %v1498_v52 = vpop.eup %1497  ;;  %v726_v47 = vmul.f32 1.442695, %v700_v63 }
 0x2c6   : > { %1501 = vpow2.f32 %v722_v10  ;;  %842 = vadd.xlane.f32.xlu0 %v1498_v52  ;;  %v1500_v30 = vpop.eup %1499 }
 0x2c7   : > { %1503 = vpow2.f32 %v716_v57  ;;  %v732_v57 = vmul.f32 1.442695, %v703_v46 }
 0x2c8   : > { %1505 = vpow2.f32 %v726_v47 }
 0x2ca   : > { %v658_v43 = vpop.permute.xlu0 %657  ;;  %v628_v29 = vpop.permute.xlu2 %627 }
 0x2cb   : > { %v699_v2 = vsub.f32 %v2154_v1, %v658_v43  ;;  %v693_v59 = vsub.f32 %v2160_v6, %v628_v29 }
 0x2cc   : > { %v1502_v25 = vpop.eup %1501 }
 0x2cd   : > { %v724_v51 = vmul.f32 1.442695, %v699_v2  ;;  %820 = vadd.xlane.f32.xlu1 %v1500_v30  ;;  %834 = vadd.xlane.f32.xlu2 %v1502_v25  ;;  %v712_v21 = vmul.f32 1.442695, %v693_v59  ;;  %v1504_v45 = vpop.eup %1503 }
 0x2ce   : > { %v1506_v0 = vpop.eup %1505 }
 0x2cf   : > { %1507 = vpow2.f32 %v724_v51 }
 0x2d0   : > { %1509 = vpow2.f32 %v712_v21 }
 0x2d2   : > { %v623_v5 = vpop.permute.xlu0 %622  ;;  %v648_v22 = vpop.permute.xlu2 %647 }
 0x2d3   : > { %v692_v26 = vsub.f32 %v2148_v60, %v623_v5  ;;  %v697_v41 = vsub.f32 %v2162_v7, %v648_v22  ;;  %v643_v44 = vpop.permute.xlu1 %642 }
 0x2d4   : > { %v696_v6 = vsub.f32 %v2150_v61, %v643_v44 }
 0x2d5   : > { %v1508_v1 = vpop.eup %1507  ;;  %v710_v18 = vmul.f32 1.442695, %v692_v26  ;;  %v720_v10 = vmul.f32 1.442695, %v697_v41  ;;  %838 = vadd.xlane.f32.xlu1 %v1506_v0  ;;  %828 = vadd.xlane.f32.xlu2 %v1504_v45  ;;  %v2625_v45 = vsub.f32 %v2238_v33, %v2244_v19  ;;  %v738_v0 = vld [vmem:[#allocation3] sm:$0xff]  ;;  %v2628_v33 = vsub.f32 %v2275_v32, %v2282_v39 }
 0x2d6   : > { %836 = vadd.xlane.f32.xlu0 %v1508_v1  ;;  %v718_v52 = vmul.f32 1.442695, %v696_v6  ;;  %v1510_v60 = vpop.eup %1509  ;;  %v2630_v32 = vsub.f32 %v2335_v4, %v2343_v13 }
 0x2d7   : > { %1511 = vpow2.f32 %v710_v18  ;;  %v778_v26 = vmul.f32 1.442695, %v2625_v45  ;;  %v772_v46 = vmul.f32 1.442695, %v2628_v33 }
 0x2d8   : > { %1513 = vpow2.f32 %v720_v10  ;;  %v2627_v10 = vsub.f32 %v2257_v24, %v2263_v28  ;;  %v2629_v24 = vsub.f32 %v2279_v36, %v2289_v42 }
 0x2d9   : > { %1515 = vpow2.f32 %v718_v52  ;;  %v742_v52 = vld [vmem:[#allocation3 + $0x20] sm:$0xff] }
 0x2da   : > { %v688_v7 = vpop.permute.xlu0 %687  ;;  %1517 = vpow2.f32 %v732_v57 }
 0x2db   : > { %v683_v63 = vpop.permute.xlu1 %682  ;;  %v705_v29 = vsub.f32 %v2181_v20, %v688_v7 }
 0x2dc   : > { %v704_v51 = vsub.f32 %v2164_v8, %v683_v63  ;;  %v2626_v8 = vsub.f32 %v2255_v23, %v2260_v27 }
 0x2dd   : > { %v1512_v47 = vpop.eup %1511  ;;  %824 = vadd.xlane.f32.xlu2 %v1510_v60  ;;  %v736_v30 = vmul.f32 1.442695, %v705_v29  ;;  %v750_v60 = vld [vmem:[#allocation3 + $0x60] sm:$0xff] }
 0x2de   : > { %v1514_v43 = vpop.eup %1513  ;;  %822 = vadd.xlane.f32.xlu0 %v1512_v47  ;;  %v734_v59 = vmul.f32 1.442695, %v704_v51  ;;  %v794_v44 = vmul.f32 1.442695, %v2626_v8  ;;  %v780_v47 = vmul.f32 1.442695, %v2629_v24 }
 0x2df   : > { %832 = vadd.xlane.f32.xlu1 %v1514_v43  ;;  %v1516_v58 = vpop.eup %1515  ;;  %1519 = vpow2.f32 %v736_v30  ;;  %v790_v30 = vmul.f32 1.442695, %v2630_v32  ;;  %v746_v51 = vld [vmem:[#allocation3 + $0x40] sm:$0xff] }
 0x2e0   : > { %v1518_v11 = vpop.eup %1517 }
 0x2e3   : > { %v668_v2 = vpop.permute.xlu1 %667 }
 0x2e4   : > { %v701_v61 = vsub.f32 %v2176_v15, %v668_v2  ;;  %v2624_v15 = vsub.f32 %v2236_v31, %v2241_v17  ;;  %v786_v31 = vmul.f32 1.442695, %v2627_v10  ;;  %v748_v10 = vld [vmem:[#allocation3 + $0x50] sm:$0xff] }
 0x2e5   : > { %v1520_v21 = vpop.eup %1519 }
 0x2e6   : > { %v728_v25 = vmul.f32 1.442695, %v701_v61  ;;  %830 = vadd.xlane.f32.xlu0 %v1516_v58  ;;  %v770_v22 = vmul.f32 1.442695, %v2624_v15  ;;  %v2631_v58 = vsub.f32 %v2304_v48, %v2311_v54 }
 0x2e7   : > { %844 = vadd.xlane.f32.xlu1 %v1518_v11 }
 0x2e8   : > { %1521 = vpow2.f32 %v728_v25  ;;  %v788_v11 = vmul.f32 1.442695, %v2631_v58 }
 0x2e9   : > { %1523 = vpow2.f32 %v734_v59  ;;  %v739_v59 = vld [vmem:[#allocation3 + $0x8] sm:$0xff] }
 0x2ea   : > { %1525 = vpow2.f32 %v770_v22  ;;  %v2632_v22 = vsub.f32 %v2365_v38, %v2371_v56 }
 0x2eb   : > { %1527 = vpow2.f32 %v778_v26 }
 0x2ec   : > { %1529 = vpow2.f32 %v794_v44  ;;  %v776_v45 = vmul.f32 1.442695, %v2632_v22 }
 0x2ed   : > { %1531 = vpow2.f32 %v786_v31  ;;  %v747_v31 = vld [vmem:[#allocation3 + $0x48] sm:$0xff] }
 0x2ee   : > { %v1522_v5 = vpop.eup %1521  ;;  %848 = vadd.xlane.f32.xlu0 %v1520_v21  ;;  %1533 = vpow2.f32 %v772_v46 }
 0x2ef   : > { %840 = vadd.xlane.f32.xlu2 %v1522_v5  ;;  %v1524_v20 = vpop.eup %1523  ;;  %1535 = vpow2.f32 %v780_v47 }
 0x2f0   : > { %v1526_v41 = vpop.eup %1525  ;;  %1537 = vpow2.f32 %v790_v30  ;;  %v741_v30 = vld [vmem:[#allocation3 + $0x18] sm:$0xff] }
 0x2f1   : > { %v802_v1 = vmul.f32 %v1526_v41, %v738_v0  ;;  %v1528_v23 = vpop.eup %1527  ;;  %1539 = vpow2.f32 %v788_v11  ;;  %v2633_v41 = vsub.f32 %v2306_v49, %v2314_v55  ;;  %v2634_v0 = vsub.f32 %v2384_v14, %v2387_v50 }
 0x2f2   : > { %v1530_v63 = vpop.eup %1529  ;;  %v806_v57 = vmul.f32 %v1528_v23, %v742_v52  ;;  %1541 = vpow2.f32 %v776_v45 }
 0x2f3   : > { %v814_v43 = vmul.f32 %v1530_v63, %v750_v60  ;;  %v1532_v61 = vpop.eup %1531  ;;  %v774_v8 = vmul.f32 1.442695, %v2633_v41 }
 0x2f4   : > { %v1534_v36 = vpop.eup %1533  ;;  %v810_v4 = vmul.f32 %v1532_v61, %v746_v51  ;;  %v740_v61 = vld [vmem:[#allocation3 + $0x10] sm:$0xff] }
 0x2f5   : > { %v803_v21 = vmul.f32 %v1534_v36, %v739_v59  ;;  %v1536_v26 = vpop.eup %1535  ;;  %1543 = vpow2.f32 %v774_v8 }
 0x2f6   : > { %v1538_v44 = vpop.eup %1537 }
 0x2f7   : > { %846 = vadd.xlane.f32.xlu2 %v1524_v20  ;;  %v1540_v38 = vpop.eup %1539  ;;  %v812_v49 = vmul.f32 %v1538_v44, %v748_v10  ;;  %v744_v44 = vld [vmem:[#allocation3 + $0x30] sm:$0xff] }
 0x2f8   : > { %v811_v46 = vmul.f32 %v1540_v38, %v747_v31  ;;  %v1542_v47 = vpop.eup %1541 }
 0x2f9   : > { %v805_v11 = vmul.f32 %v1542_v47, %v741_v30 }
 0x330   : > { %v819_v18 = vpop.xlane.xlu2 %818 }
 0x331   : > { %v2424_v6 = vadd.f32 %v819_v18, %v802_v1  ;;  %v784_v1 = vmul.f32 1.442695, %v2634_v0  ;;  %v743_v18 = vld [vmem:[#allocation3 + $0x28] sm:$0xff] }
 0x332   : > { %v807_v33 = vmul.f32 %v1536_v26, %v743_v18  ;;  %v2638_v26 = vsub.f32 %v2337_v9, %v2346_v16  ;;  %v2639_v9 = vsub.f32 %v2308_v34, %v2317_v62 }
 0x333   : > { %883 = vst.msk [vmem:[#allocation3] sm:$0xff] %vm866_vm1, %v2424_v6  ;;  %1545 = vpow2.f32 %v784_v1  ;;  %v751_v1 = vld [vmem:[#allocation3 + $0x68] sm:$0xff] }
 0x334   : > { %v792_v41 = vmul.f32 1.442695, %v2638_v26 }
 0x338   : > { %v827_v7 = vpop.xlane.xlu1 %826 }
 0x339   : > { %v2434_v29 = vadd.f32 %v827_v7, %v806_v57  ;;  %v843_v2 = vpop.xlane.xlu0 %842  ;;  %v2635_v7 = vsub.f32 %v2333_v3, %v2340_v12  ;;  %v745_v3 = vld [vmem:[#allocation3 + $0x38] sm:$0xff] }
 0x33a   : > { %v2442_v25 = vadd.f32 %v843_v2, %v814_v43  ;;  %v2636_v43 = vsub.f32 %v2277_v35, %v2285_v40  ;;  %v1544_v2 = vpop.eup %1543 }
 0x33b   : > { %887 = vst.msk [vmem:[#allocation3 + $0x20] sm:$0xff] %vm866_vm1, %v2434_v29  ;;  %v782_v24 = vmul.f32 1.442695, %v2635_v7  ;;  %v1546_v58 = vpop.eup %1545  ;;  %v804_v36 = vmul.f32 %v1544_v2, %v740_v61  ;;  %v752_v2 = vld [vmem:[#allocation3 + $0x70] sm:$0xff] }
 0x33c   : > { %895 = vst.msk [vmem:[#allocation3 + $0x60] sm:$0xff] %vm866_vm1, %v2442_v25  ;;  %v796_v32 = vmul.f32 1.442695, %v2636_v43  ;;  %v809_v35 = vmul.f32 %v1546_v58, %v745_v3 }
 0x33d   : > { %1547 = vpow2.f32 %v782_v24 }
 0x33e   : > { %1549 = vpow2.f32 %v796_v32 }
 0x340   : > { %v835_v5 = vpop.xlane.xlu2 %834  ;;  %v821_v20 = vpop.xlane.xlu1 %820 }
 0x341   : > { %v2448_v48 = vadd.f32 %v835_v5, %v810_v4  ;;  %v2450_v15 = vadd.f32 %v821_v20, %v803_v21  ;;  %v2637_v20 = vsub.f32 %v2363_v37, %v2368_v53 }
 0x343   : > { %891 = vst.msk [vmem:[#allocation3 + $0x40] sm:$0xff] %vm866_vm1, %v2448_v48  ;;  %v800_v22 = vmul.f32 1.442695, %v2637_v20  ;;  %v1548_v8 = vpop.eup %1547 }
 0x344   : > { %884 = vst.msk [vmem:[#allocation3 + $0x8] sm:$0xff] %vm866_vm1, %v2450_v15  ;;  %v1550_v0 = vpop.eup %1549  ;;  %v808_v18 = vmul.f32 %v1548_v8, %v744_v44 }
 0x345   : > { %1551 = vpow2.f32 %v800_v22  ;;  %v815_v10 = vmul.f32 %v1550_v0, %v751_v1 }
 0x346   : > { %1553 = vpow2.f32 %v792_v41 }
 0x348   : > { %v829_v23 = vpop.xlane.xlu2 %828  ;;  %v839_v52 = vpop.xlane.xlu1 %838 }
 0x349   : > { %v837_v63 = vpop.xlane.xlu0 %836  ;;  %v2465_v60 = vadd.f32 %v829_v23, %v807_v33  ;;  %v2467_v14 = vadd.f32 %v839_v52, %v812_v49  ;;  %v798_v49 = vmul.f32 1.442695, %v2639_v9  ;;  %v753_v23 = vld [vmem:[#allocation3 + $0x78] sm:$0xff] }
 0x34a   : > { %v2469_v57 = vadd.f32 %v837_v63, %v811_v46  ;;  %v749_v63 = vld [vmem:[#allocation3 + $0x58] sm:$0xff] }
 0x34b   : > { %888 = vst.msk [vmem:[#allocation3 + $0x28] sm:$0xff] %vm866_vm1, %v2465_v60  ;;  %v1552_v46 = vpop.eup %1551  ;;  %1555 = vpow2.f32 %v798_v49 }
 0x34c   : > { %892 = vst.msk [vmem:[#allocation3 + $0x48] sm:$0xff] %vm866_vm1, %v2469_v57  ;;  %v1554_v52 = vpop.eup %1553  ;;  %v817_v7 = vmul.f32 %v1552_v46, %v753_v23 }
 0x34d   : > { %893 = vst.msk [vmem:[#allocation3 + $0x50] sm:$0xff] %vm866_vm1, %v2467_v14  ;;  %v813_v47 = vmul.f32 %v1554_v52, %v749_v63 }
 0x350   : > { %v825_v51 = vpop.xlane.xlu2 %824 }
 0x351   : > { %v823_v59 = vpop.xlane.xlu0 %822  ;;  %v853_v4 = vadd.f32 %v825_v51, %v805_v11  ;;  %v1556_v34 = vpop.eup %1555 }
 0x352   : > { %v852_v21 = vadd.f32 %v823_v59, %v804_v36  ;;  %v833_v5 = vpop.xlane.xlu1 %832  ;;  %v816_v61 = vmul.f32 %v1556_v34, %v752_v2 }
 0x353   : > { %886 = vst.msk [vmem:[#allocation3 + $0x18] sm:$0xff] %vm866_vm1, %v853_v4  ;;  %v857_v45 = vadd.f32 %v833_v5, %v809_v35 }
 0x354   : > { %885 = vst.msk [vmem:[#allocation3 + $0x10] sm:$0xff] %vm866_vm1, %v852_v21 }
 0x355   : > { %890 = vst.msk [vmem:[#allocation3 + $0x38] sm:$0xff] %vm866_vm1, %v857_v45 }
 0x359   : > { %v831_v37 = vpop.xlane.xlu0 %830 }
 0x35a   : > { %v856_v38 = vadd.f32 %v831_v37, %v808_v18  ;;  %v845_v31 = vpop.xlane.xlu1 %844 }
 0x35b   : > { %v2492_v33 = vadd.f32 %v845_v31, %v815_v10 }
 0x35c   : > { %889 = vst.msk [vmem:[#allocation3 + $0x30] sm:$0xff] %vm866_vm1, %v856_v38 }
 0x35d   : > { %896 = vst.msk [vmem:[#allocation3 + $0x68] sm:$0xff] %vm866_vm1, %v2492_v33 }
 0x361   : > { %v849_v24 = vpop.xlane.xlu0 %848 }
 0x362   : > { %v2500_v43 = vadd.f32 %v849_v24, %v817_v7  ;;  %v841_v32 = vpop.xlane.xlu2 %840 }
 0x363   : > { %v861_v30 = vadd.f32 %v841_v32, %v813_v47 }
 0x364   : > { %898 = vst.msk [vmem:[#allocation3 + $0x78] sm:$0xff] %vm866_vm1, %v2500_v43 }
 0x365   : > { %894 = vst.msk [vmem:[#allocation3 + $0x58] sm:$0xff] %vm866_vm1, %v861_v30 }
 0x369   : > { %1007 = sbr.rel (%p1269_p11) target bundleno = 1303 (0x517), region = 64 }
 0x36a   : > { %v847_v58 = vpop.xlane.xlu2 %846 }
 0x36b   : > { %v864_v3 = vadd.f32 %v847_v58, %v816_v61 }
 0x36d   : > { %897 = vst.msk [vmem:[#allocation3 + $0x70] sm:$0xff] %vm866_vm1, %v864_v3 }
 0x36e   : > { %1557 = vlog2.f32 %v2424_v6  ;;  %s1271_s0 = sld [smem:[#allocation6 + $0x1]] (!%p1270_p12) }
 0x36f   : > { %1559 = vlog2.f32 %v2450_v15 }
 0x370   : > { %1561 = vlog2.f32 %v852_v21 }
 0x371   : > { %1563 = vlog2.f32 %v853_v4 }
 0x372   : > { %1565 = vlog2.f32 %v2434_v29 }
 0x373   : > { %1567 = vlog2.f32 %v2465_v60 }
 0x374   : > { %v1558_v11 = vpop.eup %1557  ;;  %1569 = vlog2.f32 %v856_v38  ;;  %s1129_s2 = smul.f32 (!%p1270_p12), 2.0, %s1271_s0 }
 0x375   : > { %v1560_v36 = vpop.eup %1559  ;;  %v1010_v51 = vmul.f32 0.6931472, %v1558_v11  ;;  %1571 = vlog2.f32 %v857_v45 }
 0x376   : > { %v1562_v59 = vpop.eup %1561  ;;  %v1012_v35 = vmul.f32 0.6931472, %v1560_v36  ;;  %1573 = vlog2.f32 %v2448_v48 }
 0x377   : > { %v1564_v5 = vpop.eup %1563  ;;  %v1014_v20 = vmul.f32 0.6931472, %v1562_v59  ;;  %1575 = vlog2.f32 %v2469_v57  ;;  %v1041_v6 = vadd.f32 %v1010_v51, %v2241_v17 }
 0x378   : > { %v1566_v15 = vpop.eup %1565  ;;  %v1016_v4 = vmul.f32 0.6931472, %v1564_v5  ;;  %v1042_v29 = vadd.f32 %v1012_v35, %v2282_v39  ;;  %1577 = vlog2.f32 %v2467_v14 }
 0x379   : > { %v1568_v60 = vpop.eup %1567  ;;  %v1018_v21 = vmul.f32 0.6931472, %v1566_v15  ;;  %v1043_v22 = vadd.f32 %v1014_v20, %v2314_v55  ;;  %v1057_v45 = vsel %vm866_vm1, %v1041_v6, 0.0  ;;  %1579 = vlog2.f32 %v861_v30 }
 0x37a   : > { %v1570_v26 = vpop.eup %1569  ;;  %v1020_v48 = vmul.f32 0.6931472, %v1568_v60  ;;  %v1044_v41 = vadd.f32 %v1016_v4, %v2371_v56  ;;  %v1058_v57 = vsel %vm866_vm1, %v1042_v29, 0.0  ;;  %1581 = vlog2.f32 %v2442_v25 }
 0x37b   : > { %v1572_v8 = vpop.eup %1571  ;;  %v1022_v17 = vmul.f32 0.6931472, %v1570_v26  ;;  %v1045_v44 = vadd.f32 %v1018_v21, %v2244_v19  ;;  %v1059_v39 = vadd.f32 %v1058_v57, %v1057_v45  ;;  %v1060_v55 = vsel %vm866_vm1, %v1043_v22, 0.0 }
 0x37c   : > { %v1574_v0 = vpop.eup %1573  ;;  %v1024_v1 = vmul.f32 0.6931472, %v1572_v8  ;;  %v1046_v14 = vadd.f32 %v1020_v48, %v2289_v42  ;;  %v1062_v38 = vsel %vm866_vm1, %v1044_v41, 0.0  ;;  %1583 = vlog2.f32 %v2492_v33 }
 0x37d   : > { %v1576_v18 = vpop.eup %1575  ;;  %v1061_v37 = vadd.f32 %v1060_v55, %v1059_v39  ;;  %v1026_v10 = vmul.f32 0.6931472, %v1574_v0  ;;  %v1047_v56 = vadd.f32 %v1022_v17, %v2340_v12  ;;  %v1064_v31 = vsel %vm866_vm1, %v1045_v44, 0.0 }
 0x37e   : > { %v1578_v9 = vpop.eup %1577  ;;  %v1028_v49 = vmul.f32 0.6931472, %v1576_v18  ;;  %v1048_v42 = vadd.f32 %v1024_v1, %v2387_v50  ;;  %v1066_v46 = vsel %vm866_vm1, %v1046_v14, 0.0  ;;  %1585 = vlog2.f32 %v864_v3 }
 0x37f   : > { %v1063_v19 = vadd.f32 %v1062_v38, %v1061_v37  ;;  %v1580_v23 = vpop.eup %1579  ;;  %v1030_v52 = vmul.f32 0.6931472, %v1578_v9  ;;  %v1049_v63 = vadd.f32 %v1026_v10, %v2263_v28  ;;  %v1068_v12 = vsel %vm866_vm1, %v1047_v56, 0.0 }
 0x380   : > { %v1582_v7 = vpop.eup %1581  ;;  %1587 = vlog2.f32 %v2500_v43  ;;  %v1032_v47 = vmul.f32 0.6931472, %v1580_v23  ;;  %v1050_v33 = vadd.f32 %v1028_v49, %v2311_v54  ;;  %v1070_v32 = vsel %vm866_vm1, %v1048_v42, 0.0 }
 0x381   : > { %v1065_v25 = vadd.f32 %v1064_v31, %v1063_v19  ;;  %v1034_v34 = vmul.f32 0.6931472, %v1582_v7  ;;  %v1051_v2 = vadd.f32 %v1030_v52, %v2343_v13  ;;  %v1072_v61 = vsel %vm866_vm1, %v1049_v63, 0.0 }
 0x382   : > { %v1584_v50 = vpop.eup %1583  ;;  %v1052_v11 = vadd.f32 %v1032_v47, %v2346_v16  ;;  %v1074_v43 = vsel %vm866_vm1, %v1050_v33, 0.0 }
 0x383   : > { %v1067_v24 = vadd.f32 %v1066_v46, %v1065_v25  ;;  %v1036_v3 = vmul.f32 0.6931472, %v1584_v50  ;;  %v1053_v54 = vadd.f32 %v1034_v34, %v2260_v27  ;;  %v1076_v35 = vsel %vm866_vm1, %v1051_v2, 0.0 }
 0x384   : > { %v1586_v58 = vpop.eup %1585  ;;  %v1078_v6 = vsel %vm866_vm1, %v1052_v11, 0.0 }
 0x385   : > { %v1069_v30 = vadd.f32 %v1068_v12, %v1067_v24  ;;  %v1038_v59 = vmul.f32 0.6931472, %v1586_v58  ;;  %v1054_v13 = vadd.f32 %v1036_v3, %v2285_v40  ;;  %v1080_v16 = vsel %vm866_vm1, %v1053_v54, 0.0 }
 0x386   : > { %v1588_v36 = vpop.eup %1587 }
 0x387   : > { %v1071_v28 = vadd.f32 %v1070_v32, %v1069_v30  ;;  %v1040_v20 = vmul.f32 0.6931472, %v1588_v36  ;;  %v1055_v4 = vadd.f32 %v1038_v59, %v2317_v62  ;;  %v1082_v21 = vsel %vm866_vm1, %v1054_v13, 0.0 }
 0x389   : > { %v1073_v51 = vadd.f32 %v1072_v61, %v1071_v28  ;;  %v1056_v60 = vadd.f32 %v1040_v20, %v2368_v53  ;;  %v1084_v27 = vsel %vm866_vm1, %v1055_v4, 0.0 }
 0x38b   : > { %v1075_v5 = vadd.f32 %v1074_v43, %v1073_v51  ;;  %v1086_v26 = vsel %vm866_vm1, %v1056_v60, 0.0 }
 0x38d   : > { %v1077_v15 = vadd.f32 %v1076_v35, %v1075_v5 }
 0x38f   : > { %v1079_v29 = vadd.f32 %v1078_v6, %v1077_v15 }
 0x391   : > { %v1081_v22 = vadd.f32 %v1080_v16, %v1079_v29 }
 0x393   : > { %v1083_v45 = vadd.f32 %v1082_v21, %v1081_v22 }
 0x395   : > { %v1085_v48 = vadd.f32 %v1084_v27, %v1083_v45 }
 0x397   : > { %v1087_v40 = vadd.f32 %v1086_v26, %v1085_v48 }
 0x399   : > { %1088 = vadd.xlane.f32.xlu0 %v1087_v40 }
 0x40c   : > { %v1089_v41 = vpop.xlane.xlu0 %1088 }
 0x40d   : > { %v1090_v57 = vrot.slane %v1089_v41, 4 }
 0x40f   : > { %v1091_v8 = vadd.f32 %v1090_v57, %v1089_v41 }
 0x411   : > { %v1092_v62 = vrot.slane %v1091_v8, 2 }
 0x413   : > { %v1093_v17 = vadd.f32 %v1092_v62, %v1091_v8 }
 0x415   : > { %v1094_v44 = vrot.slane %v1093_v17, 1 }
 0x417   : > { %v1095_v39 = vadd.f32 %v1094_v44, %v1093_v17 }
 0x419   : > { %1328 = vpush %v1095_v39 }
 0x449   : > { %1103 = sbr.rel (%p1270_p12) target bundleno = 1303 (0x517), region = 68 }
 0x44a   : > { %s1329_s11 = spop %1328 }
 0x44b   : > { %s2549_s8 = sadd.f32 %s1329_s11, %s1008_s23 }
 0x44d   : > { %1099 = sst [smem:[#allocation6]] %s2549_s8 }
 0x44e   : > { %v1104_v53 = vld [vmem:[#allocation5] sm:$0x1]  ;;  %v1105_v0 = vld [vmem:[#allocation5 + $0x1] sm:$0x1]  ;;  %v1110_v14 = vld [vmem:[#allocation4] sm:$0x1] }
 0x44f   : > { %1589 = vlog2.f32 %v1104_v53  ;;  %v1111_v37 = vld [vmem:[#allocation4 + $0x1] sm:$0x1]  ;;  %vm1114_vm2 = vcmask 1040384  }
 0x450   : > { %1591 = vlog2.f32 %v1105_v0 }
 0x455   : > { %v1590_v1 = vpop.eup %1589 }
 0x456   : > { %v1592_v55 = vpop.eup %1591  ;;  %v1107_v18 = vmul.f32 0.6931472, %v1590_v1 }
 0x457   : > { %v1109_v10 = vmul.f32 0.6931472, %v1592_v55 }
 0x458   : > { %v1112_v56 = vadd.f32 %v1110_v14, %v1107_v18 }
 0x459   : > { %v1113_v38 = vadd.f32 %v1111_v37, %v1109_v10 }
 0x45a   : > { %v1115_v31 = vsel %vm1114_vm2, %v1112_v56, 0.0 }
 0x45b   : > { %v1116_v9 = vsel %vm1114_vm2, %v1113_v38, 0.0 }
 0x45c   : > { %v1117_v19 = vadd.f32 %v1116_v9, %v1115_v31 }
 0x45e   : > { %1118 = vadd.xlane.f32.xlu0 %v1117_v19 }
 0x4d1   : > { %v1119_v49 = vpop.xlane.xlu0 %1118 }
 0x4d2   : > { %v1120_v42 = vrot.slane %v1119_v49, 4 }
 0x4d4   : > { %v1121_v46 = vadd.f32 %v1120_v42, %v1119_v49 }
 0x4d6   : > { %v1122_v23 = vrot.slane %v1121_v46, 2 }
 0x4d8   : > { %v1123_v25 = vadd.f32 %v1122_v23, %v1121_v46 }
 0x4da   : > { %v1124_v52 = vrot.slane %v1123_v25, 1 }
 0x4dc   : > { %v1125_v63 = vadd.f32 %v1124_v52, %v1123_v25 }
 0x4de   : > { %1330 = vpush %v1125_v63 }
 0x50f   : > { %s1331_s24 = spop %1330 }
 0x510   : > { %s1127_s25 = sadd.f32 %s1331_s24, %s2549_s8 }
 0x512   : > { %s1130_s9 = ssub.f32 %s1127_s25, %s1129_s2 }
 0x514   : > { %s1131_s22 = smul.f32 0.001953125, %s1130_s9 }
 0x516   : > { %1133 = sst [smem:[#allocation14]] %s1131_s22 }
 0x517 PF: > { %p1356_p13 = scmp.eq.s32.totalorder %s1943_s10, 3  ;;  %s1140_s7 = sshll.u32 %s2595_s4, 4  ;;  %s1141_s7 = int_to_ptr.hbm [resolvable:$true] %s1140_s7 }
 0x518   : > { %s1810_s29 = smov [#allocation14]  }
 0x519   : > { %1342 = dma.smem_to_hbm (%p1356_p13), %s1810_s29, 16, %s1141_s7, [#allocation10]  }
 0x51a   : > { %1754 = dma.done.wait (%p1356_p13), [#allocation10], 16  }
 0x51b   : > { %1756 = vsyncadd (%p1356_p13), [#allocation10], 4294967280 }
 0x51c   : > { %1149 = sfence }
 0x51d PF: > { %s22_s26 = sadd.s32 1, %s1799_s26   ;;  %s2640_s30 = sld [smem:[#allocation19_spill]] }
 0x51e   : > { %p19_p2 = scmp.ge.s32.totalorder %s22_s26, 6   ;;  %s2641_s19 = sld [smem:[#allocation24_spill]] }
 0x51f   : > { %s2642_s6 = sld [smem:[#allocation20_spill]]  ;;  %s2648_s17 = smov %s1763_s18 }
 0x520   : > { %s2643_s22 = sld [smem:[#allocation26_spill]]  ;;  %s2650_s20 = smov %s1775_s21 }
 0x521   : > { %s2644_s23 = sld [smem:[#allocation21_spill]]  ;;  %21 = sbr.rel (!%p19_p2) target bundleno = 13 (0xd), region = 126 }
 0x522   : > { %s2645_s0 = sld [smem:[#allocation22_spill]] }
 0x523   : > { %s2646_s24 = sld [smem:[#allocation23_spill]]  ;;  %s2649_s18 = smov %s2640_s30 }
 0x524   : > { %s2647_s25 = sld [smem:[#allocation25_spill]] }
 0x525   : > { %s2651_s21 = smov %s2642_s6 }
 0x526   :  { %1155 = vsyncpa [#allocation9], 1 }
 0x527   :  { %1157 = vsyncpa [#allocation9 + $0x1], 1 }
 0x528   :  { %1158 = vsyncpa [#allocation12], 1 }
 0x529   :  { %1160 = vsyncpa [#allocation12 + $0x1], 1 }
 0x52a   :  { %1161 = vsyncpa [#allocation10], 1 }
 0x52b   :  { %1163 = vsyncpa [#allocation10 + $0x1], 1 }

</bundles_post_ra>
